<compile_context>
chip_gen: v7x
topology: tpu7x:2x2x1
jax: 0.10.0
libtpu: 0.0.40
codegen_flags: <defaults>
</compile_context>

<pallas_src>
import jax
import jax.numpy as jnp
from jax.experimental import pallas as pl
from jax.experimental.pallas import tpu as pltpu

BN_EPS = 4e-5
_MIB = 1024 * 1024


def _vmem_limit_bytes() -> int:
    """Generation-aware scoped-VMEM limit: ~3/4 of physical, capped at 100 MiB."""
    try:
        cap = int(pltpu.get_tpu_info().vmem_capacity_bytes)
    except Exception:
        cap = 0
    if cap <= 0:
        cap = 64 * _MIB                     # conservative (v7x-sized) fallback
    return max(32 * _MIB, min((cap * 3) // 4, 100 * _MIB))


def _pick_row_block(h: int, target: int = 32) -> int:
    """Largest divisor of h that is <= target and leaves >= 2 row blocks."""
    best = 1
    for tb in range(1, min(h, target) + 1):
        if h % tb == 0 and (h // tb) >= 2:
            best = tb
    if h <= target and best == 1:
        return h                            # tiny images: single row block
    return best


# --------------------------------------------------------------------------
# Phase 1: depthwise 3x3 + pointwise 1x1 (MXU, bf16) + BN partial statistics.
# --------------------------------------------------------------------------
def dwpw_stats_kernel(x_ref, xtop_ref, xbot_ref, wd_ref, wp_ref, bpe_ref,
                      pw_ref, stats_ref, xpad_ref):
    # x_ref:     (TH, W, Cp)  f32   row block of the UNPADDED NHWC image
    # xtop_ref:  (1, W, Cp)   f32   image row i*TH-1 (clamped; zeroed at i==0)
    # xbot_ref:  (1, W, Cp)   f32   image row i*TH+TH (clamped; zeroed at last)
    # wd_ref:    (9, Cp)      f32   depthwise taps, row = kh*3 + kw
    # wp_ref:    (Cp, Cp)     bf16  pointwise weights (Cin, Cout)
    # bpe_ref:   (1, Cp)      f32   folded bias  bd @ wp + bp
    # pw_ref:    (TH*W, Cp)   bf16  pre-BN activations for this row block
    # stats_ref: (2, Cp)      f32   row 0 = sum, row 1 = sum of squares
    # xpad_ref:  (TH+2, W+2, Cp) f32 scratch: zero-padded window (halo fold)
    TH, W, Cp = x_ref.shape
    i = pl.program_id(1)
    last = pl.num_programs(1) - 1

    # Assemble the zero-padded window.  Every element is (re)written each grid
    # step, so this is megacore-safe and needs no cross-step state.
    zcol = jnp.zeros((TH + 2, 1, Cp), jnp.float32)
    xpad_ref[:, 0:1, :] = zcol                                  # left border
    xpad_ref[:, W + 1:W + 2, :] = zcol                          # right border
    xpad_ref[1:TH + 1, 1:W + 1, :] = x_ref[...]                 # interior rows
    xpad_ref[0:1, 1:W + 1, :] = jnp.where(i > 0, xtop_ref[...], 0.0)
    xpad_ref[TH + 1:TH + 2, 1:W + 1, :] = jnp.where(i < last, xbot_ref[...], 0.0)

    # Depthwise 3x3 on the VPU (f32), exact sliced-window loads of the scratch.
    acc = jnp.zeros((TH, W, Cp), jnp.float32)
    for kh in range(3):
        for kw in range(3):
            acc = acc + xpad_ref[kh:kh + TH, kw:kw + W, :] * wd_ref[kh * 3 + kw]

    # Pointwise 1x1 conv == channel matmul on the MXU (bf16 in, f32 accumulate).
    # Merging (TH, W) keeps the lane (channel) dim and sublane tiling intact.
    pw = jnp.dot(acc.reshape(TH * W, Cp).astype(jnp.bfloat16), wp_ref[...],
                 preferred_element_type=jnp.float32)
    pw = pw + bpe_ref[0]

    # BN partial statistics from the f32 accumulator, then downcast for HBM.
    s1 = jnp.sum(pw, axis=0, keepdims=True)
    s2 = jnp.sum(pw * pw, axis=0, keepdims=True)
    stats_ref[...] = jnp.concatenate([s1, s2], axis=0)
    pw_ref[...] = pw.astype(jnp.bfloat16)


# --------------------------------------------------------------------------
# Phase 2: streaming y = relu(pw * scale + shift); writes real C lanes only.
# --------------------------------------------------------------------------
def bn_relu_kernel(pw_ref, scale_ref, shift_ref, out_ref):
    c = out_ref.shape[-1]
    y = pw_ref[...].astype(jnp.float32) * scale_ref[0] + shift_ref[0]
    out_ref[...] = jnp.maximum(y, 0.0)[:, :c]


# --------------------------------------------------------------------------
# Wrapper: NCHW <-> lane-dense NHWC glue + two pallas_calls + tiny BN combine.
# --------------------------------------------------------------------------
def conv_block(x_nchw, params):
    """x_nchw: (N, C, H, W) float32. Returns (N, C, H, W) float32."""
    wd, bd, wp, bp, gamma, beta = params
    N, C, H, W = x_nchw.shape
    TH = _pick_row_block(H)
    GH = H // TH
    HW = H * W
    Cp = max(128, ((C + 127) // 128) * 128)          # lane-dense channel axis
    pc = Cp - C
    vmem_limit = _vmem_limit_bytes()

    # NCHW -> NHWC (lane = channel) + channel zero-pad.  No spatial halo pad and
    # no f32 pw round trip (handled in the kernels).
    x = jnp.transpose(x_nchw, (0, 2, 3, 1)).astype(jnp.float32)
    x = jnp.pad(x, ((0, 0), (0, 0), (0, 0), (0, pc)))

    wd_p = jnp.pad(wd, ((0, 0), (0, pc))).astype(jnp.float32)
    wp_bf = jnp.pad(wp, ((0, pc), (0, pc))).astype(jnp.bfloat16)
    bp_eff = bd.astype(jnp.float32) @ wp.astype(jnp.float32) + bp  # fold dw bias
    bpe_p = jnp.pad(bp_eff, ((0, 0), (0, pc))).astype(jnp.float32)
    gamma_p = jnp.pad(gamma, ((0, 0), (0, pc))).astype(jnp.float32)
    beta_p = jnp.pad(beta, ((0, 0), (0, pc))).astype(jnp.float32)

    cparams = pltpu.CompilerParams(
        dimension_semantics=("parallel", "parallel"),
        vmem_limit_bytes=vmem_limit)

    # ---- Phase 1: depthwise 3x3 + pointwise 1x1 + BN partial stats ----------
    pw, stats = pl.pallas_call(
        dwpw_stats_kernel,
        out_shape=(jax.ShapeDtypeStruct((N, HW, Cp), jnp.bfloat16),
                   jax.ShapeDtypeStruct((N, GH, 2, Cp), jnp.float32)),
        grid_spec=pltpu.PrefetchScalarGridSpec(
            num_scalar_prefetch=0,
            grid=(N, GH),
            in_specs=[
                pl.BlockSpec((None, TH, W, Cp), lambda n, i: (n, i, 0, 0)),
                # 1-row halos: block size 1 along H -> block index == row index.
                pl.BlockSpec((None, 1, W, Cp),
                             lambda n, i: (n, jnp.maximum(i * TH - 1, 0), 0, 0)),
                pl.BlockSpec((None, 1, W, Cp),
                             lambda n, i: (n, jnp.minimum(i * TH + TH, H - 1), 0, 0)),
                pl.BlockSpec((9, Cp), lambda n, i: (0, 0)),
                pl.BlockSpec((Cp, Cp), lambda n, i: (0, 0)),
                pl.BlockSpec((1, Cp), lambda n, i: (0, 0)),
            ],
            out_specs=[
                pl.BlockSpec((None, TH * W, Cp), lambda n, i: (n, i, 0)),
                pl.BlockSpec((None, None, 2, Cp), lambda n, i: (n, i, 0, 0)),
            ],
            scratch_shapes=[pltpu.VMEM((TH + 2, W + 2, Cp), jnp.float32)],
        ),
        compiler_params=cparams,
    )(x, x, x, wd_p, wp_bf, bpe_p)

    # ---- Tiny glue (hoisted out of the grid): combine stats -> scale/shift ----
    inv_n = 1.0 / float(N * H * W)
    sums = jnp.sum(stats[:, :, 0, :], axis=(0, 1))
    sqs = jnp.sum(stats[:, :, 1, :], axis=(0, 1))
    mean = sums * inv_n
    var = jnp.maximum(sqs * inv_n - mean * mean, 0.0)   # biased batch variance
    scale = (gamma_p[0] * jax.lax.rsqrt(var + BN_EPS))[None, :]
    shift = (beta_p[0] - mean * scale[0])[None, :]

    # ---- Phase 2: streaming normalize + affine + ReLU ------------------------
    out_flat = pl.pallas_call(
        bn_relu_kernel,
        out_shape=jax.ShapeDtypeStruct((N, HW, C), jnp.float32),
        grid_spec=pltpu.PrefetchScalarGridSpec(
            num_scalar_prefetch=0,
            grid=(N, GH),
            in_specs=[
                pl.BlockSpec((None, TH * W, Cp), lambda n, i: (n, i, 0)),
                pl.BlockSpec((1, Cp), lambda n, i: (0, 0)),
                pl.BlockSpec((1, Cp), lambda n, i: (0, 0)),
            ],
            out_specs=pl.BlockSpec((None, TH * W, C), lambda n, i: (n, i, 0)),
        ),
        compiler_params=cparams,
    )(pw, scale, shift)

    return jnp.transpose(out_flat.reshape(N, H, W, C), (0, 3, 1, 2))


def init_params(key, num_channels):
    """Deterministic synthetic parameters (shapes match nn.Module.__init__)."""
    k1, k2, k3, k4 = jax.random.split(key, 4)
    C = num_channels
    wd = jax.random.normal(k1, (9, C), jnp.float32) * 0.2     # depthwise (3x3, C)
    bd = jax.random.normal(k2, (1, C), jnp.float32) * 0.1
    wp = jax.random.normal(k3, (C, C), jnp.float32) * 0.2     # pointwise (Cin, Cout)
    bp = jax.random.normal(k4, (1, C), jnp.float32) * 0.1
    gamma = jnp.ones((1, C), jnp.float32)                     # BN weight
    beta = jnp.zeros((1, C), jnp.float32)                     # BN bias
    return wd, bd, wp, bp, gamma, beta


def conv_block_reference(x_nchw, params):
    """Plain-JAX reference.

    Mirrors the kernel's mixed-precision policy (bf16 MXU operands and bf16
    pre-BN intermediate; f32 accumulation and f32 BN statistics), which is the
    standard TPU policy requested by the perf review.  Apart from that rounding
    policy it is the exact train-mode forward of the PyTorch module."""
    wd, bd, wp, bp, gamma, beta = params
    x = jnp.transpose(x_nchw, (0, 2, 3, 1)).astype(jnp.float32)
    N, H, W, C = x.shape
    xpad = jnp.pad(x, ((0, 0), (1, 1), (1, 1), (0, 0)))
    acc = jnp.zeros((N, H, W, C), jnp.float32)
    for kh in range(3):
        for kw in range(3):
            acc = acc + xpad[:, kh:kh + H, kw:kw + W, :] * wd[kh * 3 + kw]
    bp_eff = bd @ wp + bp                           # same exact bias folding
    pw = jnp.dot(acc.reshape(N * H * W, C).astype(jnp.bfloat16),
                 wp.astype(jnp.bfloat16),
                 preferred_element_type=jnp.float32) + bp_eff[0]
    mean = jnp.mean(pw, axis=0)
    var = jnp.maximum(jnp.mean(pw * pw, axis=0) - mean * mean, 0.0)
    scale = gamma[0] * jax.lax.rsqrt(var + BN_EPS)
    shift = beta[0] - mean * scale
    pw_bf = pw.astype(jnp.bfloat16).astype(jnp.float32)
    y = jnp.maximum(pw_bf * scale + shift, 0.0).reshape(N, H, W, C)
    return jnp.transpose(y, (0, 3, 1, 2))


if __name__ == "__main__":
    N, C, H, W = 2, 4, 16, 16
    key = jax.random.PRNGKey(0)
    kx, kp = jax.random.split(key)
    x = jax.random.normal(kx, (N, C, H, W), jnp.float32)
    params = init_params(kp, C)

    out = jax.block_until_ready(jax.jit(conv_block)(x, params))
    ref = jax.block_until_ready(conv_block_reference(x, params))

    assert out.shape == (N, C, H, W) and out.dtype == jnp.float32
    # atol accommodates single-ulp bf16 rounding of the pre-BN intermediate,
    # which BN's 1/sigma can amplify for low-variance channels at this tiny
    # C=4 test size; systematic agreement is ~1e-5.
    assert jnp.allclose(out, ref, rtol=1e-2, atol=5e-2), "mismatch vs reference"
    print("KERNEL_OK")
</pallas_src>

<mosaic_0001>
module attributes {stable_mosaic.version = 11 : i64} {
  func.func @bn_relu_kernel(%arg0: i32, %arg1: i32, %arg2: memref<1x128x128xbf16, #tpu.memory_space<vmem>>, %arg3: memref<1x128xf32, #tpu.memory_space<vmem>>, %arg4: memref<1x128xf32, #tpu.memory_space<vmem>>, %arg5: memref<1x128x4xf32, #tpu.memory_space<vmem>>) attributes {dimension_semantics = [#tpu.dimension_semantics<parallel>, #tpu.dimension_semantics<parallel>], iteration_bounds = array<i64: 2, 2>, scalar_prefetch = 0 : i64, scratch_operands = 0 : i64, tpu.core_type = #tpu.core_type<tc>, window_params = [{transform_indices = @transform_0, window_bounds = array<i64: 1, 128, 128>}, {pipeline_mode = #tpu.pipeline_mode<synchronous>, transform_indices = @transform_1, window_bounds = array<i64: 1, 128>}, {pipeline_mode = #tpu.pipeline_mode<synchronous>, transform_indices = @transform_2, window_bounds = array<i64: 1, 128>}, {transform_indices = @transform_3, window_bounds = array<i64: 1, 128, 4>}]} {
    %c0 = arith.constant 0 : index
    %c0_0 = arith.constant 0 : index
    %c0_1 = arith.constant 0 : index
    %0 = vector.load %arg2[%c0, %c0_0, %c0_1] : memref<1x128x128xbf16, #tpu.memory_space<vmem>>, vector<1x128x128xbf16>
    %1 = vector.shape_cast %0 : vector<1x128x128xbf16> to vector<128x128xbf16>
    %2 = arith.extf %1 : vector<128x128xbf16> to vector<128x128xf32>
    %c0_2 = arith.constant 0 : index
    %c0_3 = arith.constant 0 : index
    %3 = vector.load %arg3[%c0_2, %c0_3] : memref<1x128xf32, #tpu.memory_space<vmem>>, vector<1x128xf32>
    %4 = vector.shape_cast %3 : vector<1x128xf32> to vector<128xf32>
    %5 = vector.shape_cast %4 : vector<128xf32> to vector<1x128xf32>
    %6 = vector.broadcast %5 : vector<1x128xf32> to vector<128x128xf32>
    %7 = arith.mulf %2, %6 : vector<128x128xf32>
    %c0_4 = arith.constant 0 : index
    %c0_5 = arith.constant 0 : index
    %8 = vector.load %arg4[%c0_4, %c0_5] : memref<1x128xf32, #tpu.memory_space<vmem>>, vector<1x128xf32>
    %9 = vector.shape_cast %8 : vector<1x128xf32> to vector<128xf32>
    %10 = vector.shape_cast %9 : vector<128xf32> to vector<1x128xf32>
    %11 = vector.broadcast %10 : vector<1x128xf32> to vector<128x128xf32>
    %12 = arith.addf %7, %11 : vector<128x128xf32>
    %cst = arith.constant 0.000000e+00 : f32
    %13 = vector.broadcast %cst : f32 to vector<128x128xf32>
    %14 = arith.maximumf %12, %13 : vector<128x128xf32>
    %15 = vector.extract_strided_slice %14 {offsets = [0, 0], sizes = [128, 4], strides = [1, 1]} : vector<128x128xf32> to vector<128x4xf32>
    %c0_6 = arith.constant 0 : index
    %c0_7 = arith.constant 0 : index
    %c0_8 = arith.constant 0 : index
    %16 = vector.load %arg5[%c0_6, %c0_7, %c0_8] : memref<1x128x4xf32, #tpu.memory_space<vmem>>, vector<1x128x4xf32>
    %17 = vector.shape_cast %16 : vector<1x128x4xf32> to vector<128x4xf32>
    %18 = vector.shape_cast %15 : vector<128x4xf32> to vector<1x128x4xf32>
    tpu.vector_store %arg5[%c0_6, %c0_7, %c0_8], %18 {strides = array<i32>} : memref<1x128x4xf32, #tpu.memory_space<vmem>>, vector<1x128x4xf32>,
    return
  }
  func.func @transform_0(%arg0: i32, %arg1: i32) -> (i32, i32, i32) {
    %c0_i32 = arith.constant 0 : i32
    %c0_i32_0 = arith.constant 0 : i32
    return %arg0, %arg1, %c0_i32 : i32, i32, i32
  }
  func.func @transform_1(%arg0: i32, %arg1: i32) -> (i32, i32) {
    %c0_i32 = arith.constant 0 : i32
    %c0_i32_0 = arith.constant 0 : i32
    %c0_i32_1 = arith.constant 0 : i32
    return %c0_i32, %c0_i32_0 : i32, i32
  }
  func.func @transform_2(%arg0: i32, %arg1: i32) -> (i32, i32) {
    %c0_i32 = arith.constant 0 : i32
    %c0_i32_0 = arith.constant 0 : i32
    %c0_i32_1 = arith.constant 0 : i32
    return %c0_i32, %c0_i32_0 : i32, i32
  }
  func.func @transform_3(%arg0: i32, %arg1: i32) -> (i32, i32, i32) {
    %c0_i32 = arith.constant 0 : i32
    %c0_i32_0 = arith.constant 0 : i32
    return %arg0, %arg1, %c0_i32 : i32, i32, i32
  }
}

module attributes {stable_mosaic.version = 11 : i64} {
  func.func @dwpw_stats_kernel(%arg0: i32, %arg1: i32, %arg2: memref<1x8x16x128xf32, #tpu.memory_space<vmem>>, %arg3: memref<1x1x16x128xf32, #tpu.memory_space<vmem>>, %arg4: memref<1x1x16x128xf32, #tpu.memory_space<vmem>>, %arg5: memref<9x128xf32, #tpu.memory_space<vmem>>, %arg6: memref<128x128xbf16, #tpu.memory_space<vmem>>, %arg7: memref<1x128xf32, #tpu.memory_space<vmem>>, %arg8: memref<1x128x128xbf16, #tpu.memory_space<vmem>>, %arg9: memref<1x1x2x128xf32, #tpu.memory_space<vmem>>, %arg10: memref<10x18x128xf32, #tpu.memory_space<vmem>>) attributes {dimension_semantics = [#tpu.dimension_semantics<parallel>, #tpu.dimension_semantics<parallel>], iteration_bounds = array<i64: 2, 2>, scalar_prefetch = 0 : i64, scratch_operands = 1 : i64, tpu.core_type = #tpu.core_type<tc>, window_params = [{transform_indices = @transform_0, window_bounds = array<i64: 1, 8, 16, 128>}, {transform_indices = @transform_1, window_bounds = array<i64: 1, 1, 16, 128>}, {transform_indices = @transform_2, window_bounds = array<i64: 1, 1, 16, 128>}, {pipeline_mode = #tpu.pipeline_mode<synchronous>, transform_indices = @transform_3, window_bounds = array<i64: 9, 128>}, {pipeline_mode = #tpu.pipeline_mode<synchronous>, transform_indices = @transform_4, window_bounds = array<i64: 128, 128>}, {pipeline_mode = #tpu.pipeline_mode<synchronous>, transform_indices = @transform_5, window_bounds = array<i64: 1, 128>}, {transform_indices = @transform_6, window_bounds = array<i64: 1, 128, 128>}, {transform_indices = @transform_7, window_bounds = array<i64: 1, 1, 2, 128>}]} {
    %cst = arith.constant 0.000000e+00 : f32
    %0 = vector.broadcast %cst : f32 to vector<10x1x128xf32>
    %c0 = arith.constant 0 : index
    %c0_0 = arith.constant 0 : index
    %c0_1 = arith.constant 0 : index
    %1 = vector.load %arg10[%c0, %c0_0, %c0_1] : memref<10x18x128xf32, #tpu.memory_space<vmem>>, vector<10x1x128xf32>
    tpu.vector_store %arg10[%c0, %c0_0, %c0_1], %0 {strides = array<i32>} : memref<10x18x128xf32, #tpu.memory_space<vmem>>, vector<10x1x128xf32>,
    %c0_2 = arith.constant 0 : index
    %c17 = arith.constant 17 : index
    %c0_3 = arith.constant 0 : index
    %2 = vector.load %arg10[%c0_2, %c17, %c0_3] : memref<10x18x128xf32, #tpu.memory_space<vmem>>, vector<10x1x128xf32>
    tpu.vector_store %arg10[%c0_2, %c17, %c0_3], %0 {strides = array<i32>} : memref<10x18x128xf32, #tpu.memory_space<vmem>>, vector<10x1x128xf32>,
    %c0_4 = arith.constant 0 : index
    %c0_5 = arith.constant 0 : index
    %c0_6 = arith.constant 0 : index
    %c0_7 = arith.constant 0 : index
    %3 = vector.load %arg2[%c0_4, %c0_5, %c0_6, %c0_7] : memref<1x8x16x128xf32, #tpu.memory_space<vmem>>, vector<1x8x16x128xf32>
    %4 = vector.shape_cast %3 : vector<1x8x16x128xf32> to vector<8x16x128xf32>
    %c1 = arith.constant 1 : index
    %c1_8 = arith.constant 1 : index
    %c0_9 = arith.constant 0 : index
    %5 = vector.load %arg10[%c1, %c1_8, %c0_9] : memref<10x18x128xf32, #tpu.memory_space<vmem>>, vector<8x16x128xf32>
    tpu.vector_store %arg10[%c1, %c1_8, %c0_9], %4 {strides = array<i32>} : memref<10x18x128xf32, #tpu.memory_space<vmem>>, vector<8x16x128xf32>,
    %c0_i32 = arith.constant 0 : i32
    %6 = arith.cmpi sgt, %arg1, %c0_i32 : i32
    %c0_10 = arith.constant 0 : index
    %c0_11 = arith.constant 0 : index
    %c0_12 = arith.constant 0 : index
    %c0_13 = arith.constant 0 : index
    %7 = vector.load %arg3[%c0_10, %c0_11, %c0_12, %c0_13] : memref<1x1x16x128xf32, #tpu.memory_space<vmem>>, vector<1x1x16x128xf32>
    %8 = vector.shape_cast %7 : vector<1x1x16x128xf32> to vector<1x16x128xf32>
    %cst_14 = arith.constant 0.000000e+00 : f32
    %9 = vector.broadcast %cst_14 : f32 to vector<1x16x128xf32>
    %10 = arith.select %6, %8, %9 : vector<1x16x128xf32>
    %c0_15 = arith.constant 0 : index
    %c1_16 = arith.constant 1 : index
    %c0_17 = arith.constant 0 : index
    %11 = vector.load %arg10[%c0_15, %c1_16, %c0_17] : memref<10x18x128xf32, #tpu.memory_space<vmem>>, vector<1x16x128xf32>
    tpu.vector_store %arg10[%c0_15, %c1_16, %c0_17], %10 {strides = array<i32>} : memref<10x18x128xf32, #tpu.memory_space<vmem>>, vector<1x16x128xf32>,
    %c1_i32 = arith.constant 1 : i32
    %12 = arith.cmpi slt, %arg1, %c1_i32 : i32
    %c0_18 = arith.constant 0 : index
    %c0_19 = arith.constant 0 : index
    %c0_20 = arith.constant 0 : index
    %c0_21 = arith.constant 0 : index
    %13 = vector.load %arg4[%c0_18, %c0_19, %c0_20, %c0_21] : memref<1x1x16x128xf32, #tpu.memory_space<vmem>>, vector<1x1x16x128xf32>
    %14 = vector.shape_cast %13 : vector<1x1x16x128xf32> to vector<1x16x128xf32>
    %cst_22 = arith.constant 0.000000e+00 : f32
    %15 = vector.broadcast %cst_22 : f32 to vector<1x16x128xf32>
    %16 = arith.select %12, %14, %15 : vector<1x16x128xf32>
    %c9 = arith.constant 9 : index
    %c1_23 = arith.constant 1 : index
    %c0_24 = arith.constant 0 : index
    %17 = vector.load %arg10[%c9, %c1_23, %c0_24] : memref<10x18x128xf32, #tpu.memory_space<vmem>>, vector<1x16x128xf32>
    tpu.vector_store %arg10[%c9, %c1_23, %c0_24], %16 {strides = array<i32>} : memref<10x18x128xf32, #tpu.memory_space<vmem>>, vector<1x16x128xf32>,
    %cst_25 = arith.constant 0.000000e+00 : f32
    %18 = vector.broadcast %cst_25 : f32 to vector<8x16x128xf32>
    %c0_26 = arith.constant 0 : index
    %c0_27 = arith.constant 0 : index
    %c0_28 = arith.constant 0 : index
    %19 = vector.load %arg10[%c0_26, %c0_27, %c0_28] : memref<10x18x128xf32, #tpu.memory_space<vmem>>, vector<8x16x128xf32>
    %c0_29 = arith.constant 0 : index
    %c0_30 = arith.constant 0 : index
    %20 = vector.load %arg5[%c0_29, %c0_30] : memref<9x128xf32, #tpu.memory_space<vmem>>, vector<1x128xf32>
    %21 = vector.shape_cast %20 : vector<1x128xf32> to vector<128xf32>
    %22 = vector.shape_cast %21 : vector<128xf32> to vector<1x1x128xf32>
    %23 = vector.broadcast %22 : vector<1x1x128xf32> to vector<8x16x128xf32>
    %24 = arith.mulf %19, %23 : vector<8x16x128xf32>
    %25 = arith.addf %18, %24 : vector<8x16x128xf32>
    %c0_31 = arith.constant 0 : index
    %c1_32 = arith.constant 1 : index
    %c0_33 = arith.constant 0 : index
    %26 = vector.load %arg10[%c0_31, %c1_32, %c0_33] : memref<10x18x128xf32, #tpu.memory_space<vmem>>, vector<8x16x128xf32>
    %c1_34 = arith.constant 1 : index
    %c0_35 = arith.constant 0 : index
    %27 = vector.load %arg5[%c1_34, %c0_35] : memref<9x128xf32, #tpu.memory_space<vmem>>, vector<1x128xf32>
    %28 = vector.shape_cast %27 : vector<1x128xf32> to vector<128xf32>
    %29 = vector.shape_cast %28 : vector<128xf32> to vector<1x1x128xf32>
    %30 = vector.broadcast %29 : vector<1x1x128xf32> to vector<8x16x128xf32>
    %31 = arith.mulf %26, %30 : vector<8x16x128xf32>
    %32 = arith.addf %25, %31 : vector<8x16x128xf32>
    %c0_36 = arith.constant 0 : index
    %c2 = arith.constant 2 : index
    %c0_37 = arith.constant 0 : index
    %33 = vector.load %arg10[%c0_36, %c2, %c0_37] : memref<10x18x128xf32, #tpu.memory_space<vmem>>, vector<8x16x128xf32>
    %c2_38 = arith.constant 2 : index
    %c0_39 = arith.constant 0 : index
    %34 = vector.load %arg5[%c2_38, %c0_39] : memref<9x128xf32, #tpu.memory_space<vmem>>, vector<1x128xf32>
    %35 = vector.shape_cast %34 : vector<1x128xf32> to vector<128xf32>
    %36 = vector.shape_cast %35 : vector<128xf32> to vector<1x1x128xf32>
    %37 = vector.broadcast %36 : vector<1x1x128xf32> to vector<8x16x128xf32>
    %38 = arith.mulf %33, %37 : vector<8x16x128xf32>
    %39 = arith.addf %32, %38 : vector<8x16x128xf32>
    %c1_40 = arith.constant 1 : index
    %c0_41 = arith.constant 0 : index
    %c0_42 = arith.constant 0 : index
    %40 = vector.load %arg10[%c1_40, %c0_41, %c0_42] : memref<10x18x128xf32, #tpu.memory_space<vmem>>, vector<8x16x128xf32>
    %c3 = arith.constant 3 : index
    %c0_43 = arith.constant 0 : index
    %41 = vector.load %arg5[%c3, %c0_43] : memref<9x128xf32, #tpu.memory_space<vmem>>, vector<1x128xf32>
    %42 = vector.shape_cast %41 : vector<1x128xf32> to vector<128xf32>
    %43 = vector.shape_cast %42 : vector<128xf32> to vector<1x1x128xf32>
    %44 = vector.broadcast %43 : vector<1x1x128xf32> to vector<8x16x128xf32>
    %45 = arith.mulf %40, %44 : vector<8x16x128xf32>
    %46 = arith.addf %39, %45 : vector<8x16x128xf32>
    %c1_44 = arith.constant 1 : index
    %c1_45 = arith.constant 1 : index
    %c0_46 = arith.constant 0 : index
    %47 = vector.load %arg10[%c1_44, %c1_45, %c0_46] : memref<10x18x128xf32, #tpu.memory_space<vmem>>, vector<8x16x128xf32>
    %c4 = arith.constant 4 : index
    %c0_47 = arith.constant 0 : index
    %48 = vector.load %arg5[%c4, %c0_47] : memref<9x128xf32, #tpu.memory_space<vmem>>, vector<1x128xf32>
    %49 = vector.shape_cast %48 : vector<1x128xf32> to vector<128xf32>
    %50 = vector.shape_cast %49 : vector<128xf32> to vector<1x1x128xf32>
    %51 = vector.broadcast %50 : vector<1x1x128xf32> to vector<8x16x128xf32>
    %52 = arith.mulf %47, %51 : vector<8x16x128xf32>
    %53 = arith.addf %46, %52 : vector<8x16x128xf32>
    %c1_48 = arith.constant 1 : index
    %c2_49 = arith.constant 2 : index
    %c0_50 = arith.constant 0 : index
    %54 = vector.load %arg10[%c1_48, %c2_49, %c0_50] : memref<10x18x128xf32, #tpu.memory_space<vmem>>, vector<8x16x128xf32>
    %c5 = arith.constant 5 : index
    %c0_51 = arith.constant 0 : index
    %55 = vector.load %arg5[%c5, %c0_51] : memref<9x128xf32, #tpu.memory_space<vmem>>, vector<1x128xf32>
    %56 = vector.shape_cast %55 : vector<1x128xf32> to vector<128xf32>
    %57 = vector.shape_cast %56 : vector<128xf32> to vector<1x1x128xf32>
    %58 = vector.broadcast %57 : vector<1x1x128xf32> to vector<8x16x128xf32>
    %59 = arith.mulf %54, %58 : vector<8x16x128xf32>
    %60 = arith.addf %53, %59 : vector<8x16x128xf32>
    %c2_52 = arith.constant 2 : index
    %c0_53 = arith.constant 0 : index
    %c0_54 = arith.constant 0 : index
    %61 = vector.load %arg10[%c2_52, %c0_53, %c0_54] : memref<10x18x128xf32, #tpu.memory_space<vmem>>, vector<8x16x128xf32>
    %c6 = arith.constant 6 : index
    %c0_55 = arith.constant 0 : index
    %62 = vector.load %arg5[%c6, %c0_55] : memref<9x128xf32, #tpu.memory_space<vmem>>, vector<1x128xf32>
    %63 = vector.shape_cast %62 : vector<1x128xf32> to vector<128xf32>
    %64 = vector.shape_cast %63 : vector<128xf32> to vector<1x1x128xf32>
    %65 = vector.broadcast %64 : vector<1x1x128xf32> to vector<8x16x128xf32>
    %66 = arith.mulf %61, %65 : vector<8x16x128xf32>
    %67 = arith.addf %60, %66 : vector<8x16x128xf32>
    %c2_56 = arith.constant 2 : index
    %c1_57 = arith.constant 1 : index
    %c0_58 = arith.constant 0 : index
    %68 = vector.load %arg10[%c2_56, %c1_57, %c0_58] : memref<10x18x128xf32, #tpu.memory_space<vmem>>, vector<8x16x128xf32>
    %c7 = arith.constant 7 : index
    %c0_59 = arith.constant 0 : index
    %69 = vector.load %arg5[%c7, %c0_59] : memref<9x128xf32, #tpu.memory_space<vmem>>, vector<1x128xf32>
    %70 = vector.shape_cast %69 : vector<1x128xf32> to vector<128xf32>
    %71 = vector.shape_cast %70 : vector<128xf32> to vector<1x1x128xf32>
    %72 = vector.broadcast %71 : vector<1x1x128xf32> to vector<8x16x128xf32>
    %73 = arith.mulf %68, %72 : vector<8x16x128xf32>
    %74 = arith.addf %67, %73 : vector<8x16x128xf32>
    %c2_60 = arith.constant 2 : index
    %c2_61 = arith.constant 2 : index
    %c0_62 = arith.constant 0 : index
    %75 = vector.load %arg10[%c2_60, %c2_61, %c0_62] : memref<10x18x128xf32, #tpu.memory_space<vmem>>, vector<8x16x128xf32>
    %c8 = arith.constant 8 : index
    %c0_63 = arith.constant 0 : index
    %76 = vector.load %arg5[%c8, %c0_63] : memref<9x128xf32, #tpu.memory_space<vmem>>, vector<1x128xf32>
    %77 = vector.shape_cast %76 : vector<1x128xf32> to vector<128xf32>
    %78 = vector.shape_cast %77 : vector<128xf32> to vector<1x1x128xf32>
    %79 = vector.broadcast %78 : vector<1x1x128xf32> to vector<8x16x128xf32>
    %80 = arith.mulf %75, %79 : vector<8x16x128xf32>
    %81 = arith.addf %74, %80 : vector<8x16x128xf32>
    %82 = vector.shape_cast %81 : vector<8x16x128xf32> to vector<128x128xf32>
    %83 = arith.truncf %82 : vector<128x128xf32> to vector<128x128xbf16>
    %c0_64 = arith.constant 0 : index
    %c0_65 = arith.constant 0 : index
    %84 = vector.load %arg6[%c0_64, %c0_65] : memref<128x128xbf16, #tpu.memory_space<vmem>>, vector<128x128xbf16>
    %cst_66 = arith.constant dense<0.000000e+00> : vector<128x128xf32>
    %85 = tpu.matmul %83, %84, %cst_66 {dimension_numbers = #tpu.dot_dimension_numbers<[1], [0], [0], [1], [0, 0, 1, 1], [], []>} : vector<128x128xbf16>, vector<128x128xbf16>, vector<128x128xf32> -> vector<128x128xf32>
    %c0_67 = arith.constant 0 : index
    %c0_68 = arith.constant 0 : index
    %86 = vector.load %arg7[%c0_67, %c0_68] : memref<1x128xf32, #tpu.memory_space<vmem>>, vector<1x128xf32>
    %87 = vector.shape_cast %86 : vector<1x128xf32> to vector<128xf32>
    %88 = vector.shape_cast %87 : vector<128xf32> to vector<1x128xf32>
    %89 = vector.broadcast %88 : vector<1x128xf32> to vector<128x128xf32>
    %90 = arith.addf %85, %89 : vector<128x128xf32>
    %cst_69 = arith.constant dense<0.000000e+00> : vector<128xf32>
    %91 = vector.multi_reduction <add>, %90, %cst_69 [0] : vector<128x128xf32> to vector<128xf32>
    %92 = vector.shape_cast %91 : vector<128xf32> to vector<1x128xf32>
    %93 = arith.mulf %90, %90 : vector<128x128xf32>
    %cst_70 = arith.constant dense<0.000000e+00> : vector<128xf32>
    %94 = vector.multi_reduction <add>, %93, %cst_70 [0] : vector<128x128xf32> to vector<128xf32>
    %95 = vector.shape_cast %94 : vector<128xf32> to vector<1x128xf32>
    %96 = tpu.concatenate %92, %95 in 0 : vector<1x128xf32>, vector<1x128xf32> -> vector<2x128xf32>
    %c0_71 = arith.constant 0 : index
    %c0_72 = arith.constant 0 : index
    %c0_73 = arith.constant 0 : index
    %c0_74 = arith.constant 0 : index
    %97 = vector.load %arg9[%c0_71, %c0_72, %c0_73, %c0_74] : memref<1x1x2x128xf32, #tpu.memory_space<vmem>>, vector<1x1x2x128xf32>
    %98 = vector.shape_cast %97 : vector<1x1x2x128xf32> to vector<2x128xf32>
    %99 = vector.shape_cast %96 : vector<2x128xf32> to vector<1x1x2x128xf32>
    tpu.vector_store %arg9[%c0_71, %c0_72, %c0_73, %c0_74], %99 {strides = array<i32>} : memref<1x1x2x128xf32, #tpu.memory_space<vmem>>, vector<1x1x2x128xf32>,
    %100 = arith.truncf %90 : vector<128x128xf32> to vector<128x128xbf16>
    %c0_75 = arith.constant 0 : index
    %c0_76 = arith.constant 0 : index
    %c0_77 = arith.constant 0 : index
    %101 = vector.load %arg8[%c0_75, %c0_76, %c0_77] : memref<1x128x128xbf16, #tpu.memory_space<vmem>>, vector<1x128x128xbf16>
    %102 = vector.shape_cast %101 : vector<1x128x128xbf16> to vector<128x128xbf16>
    %103 = vector.shape_cast %100 : vector<128x128xbf16> to vector<1x128x128xbf16>
    tpu.vector_store %arg8[%c0_75, %c0_76, %c0_77], %103 {strides = array<i32>} : memref<1x128x128xbf16, #tpu.memory_space<vmem>>, vector<1x128x128xbf16>,
    return
  }
  func.func @transform_0(%arg0: i32, %arg1: i32) -> (i32, i32, i32, i32) {
    %c0_i32 = arith.constant 0 : i32
    %c0_i32_0 = arith.constant 0 : i32
    %c0_i32_1 = arith.constant 0 : i32
    return %arg0, %arg1, %c0_i32, %c0_i32_0 : i32, i32, i32, i32
  }
  func.func @transform_1(%arg0: i32, %arg1: i32) -> (i32, i32, i32, i32) {
    %c8_i32 = arith.constant 8 : i32
    %0 = arith.muli %arg1, %c8_i32 : i32
    %c1_i32 = arith.constant 1 : i32
    %1 = arith.subi %0, %c1_i32 : i32
    %c0_i32 = arith.constant 0 : i32
    %2 = arith.maxsi %1, %c0_i32 : i32
    %c0_i32_0 = arith.constant 0 : i32
    %c0_i32_1 = arith.constant 0 : i32
    %c0_i32_2 = arith.constant 0 : i32
    return %arg0, %2, %c0_i32_0, %c0_i32_1 : i32, i32, i32, i32
  }
  func.func @transform_2(%arg0: i32, %arg1: i32) -> (i32, i32, i32, i32) {
    %c8_i32 = arith.constant 8 : i32
    %0 = arith.muli %arg1, %c8_i32 : i32
    %c8_i32_0 = arith.constant 8 : i32
    %1 = arith.addi %0, %c8_i32_0 : i32
    %c15_i32 = arith.constant 15 : i32
    %2 = arith.minsi %1, %c15_i32 : i32
    %c0_i32 = arith.constant 0 : i32
    %c0_i32_1 = arith.constant 0 : i32
    %c0_i32_2 = arith.constant 0 : i32
    return %arg0, %2, %c0_i32, %c0_i32_1 : i32, i32, i32, i32
  }
  func.func @transform_3(%arg0: i32, %arg1: i32) -> (i32, i32) {
    %c0_i32 = arith.constant 0 : i32
    %c0_i32_0 = arith.constant 0 : i32
    %c0_i32_1 = arith.constant 0 : i32
    return %c0_i32, %c0_i32_0 : i32, i32
  }
  func.func @transform_4(%arg0: i32, %arg1: i32) -> (i32, i32) {
    %c0_i32 = arith.constant 0 : i32
    %c0_i32_0 = arith.constant 0 : i32
    %c0_i32_1 = arith.constant 0 : i32
    return %c0_i32, %c0_i32_0 : i32, i32
  }
  func.func @transform_5(%arg0: i32, %arg1: i32) -> (i32, i32) {
    %c0_i32 = arith.constant 0 : i32
    %c0_i32_0 = arith.constant 0 : i32
    %c0_i32_1 = arith.constant 0 : i32
    return %c0_i32, %c0_i32_0 : i32, i32
  }
  func.func @transform_6(%arg0: i32, %arg1: i32) -> (i32, i32, i32) {
    %c0_i32 = arith.constant 0 : i32
    %c0_i32_0 = arith.constant 0 : i32
    return %arg0, %arg1, %c0_i32 : i32, i32, i32
  }
  func.func @transform_7(%arg0: i32, %arg1: i32) -> (i32, i32, i32, i32) {
    %c0_i32 = arith.constant 0 : i32
    %c0_i32_0 = arith.constant 0 : i32
    %c0_i32_1 = arith.constant 0 : i32
    return %arg0, %arg1, %c0_i32, %c0_i32_0 : i32, i32, i32, i32
  }
}

</mosaic_0001>

<bundles_post_ra>
// kernel: conv_block.3
= control target key start
LH: loop header
LB: loop body
LE: loop exit
PB: predicated region body
PF: predicated region fallthrough
CT: control target
= control target key end

     0   :  { %s565_s12 = smov 0   ;;  %s567_s13 = smov 0   ;;  %s706_s0 = inlined_call_operand.vmem [shape: bf16[2,256,128], index: 0, kind: input, shape index: {}]   ;;  %s707_s1 = inlined_call_operand.vmem [shape: f32[1,128], index: 1, kind: input, shape index: {}]   ;;  %s708_s2 = inlined_call_operand.vmem [shape: f32[1,128], index: 2, kind: input, shape index: {}]   ;;  %s709_s3 = inlined_call_operand.vmem [shape: f32[2,256,4], index: 3, kind: output, shape index: {}]  }
   0x1   :  { %s569_s14 = smov 0   ;;  %s571_s15 = smov 0  }
   0x2   :  { %s573_s16 = smov 0  }
   0x3 LB: > { %s22_s17 = sadd.s32 1, %s535_s14  ;;  %s25_s18 = sadd.s32 1, %s539_s15  ;;  %s543_s16 = sphi %s573_s16, %s13_s16   ;;  %s539_s15 = sphi %s571_s15, %s713_s15   ;;  %s535_s14 = sphi %s569_s14, %s712_s14   ;;  %s531_s13 = sphi %s567_s13, %s711_s13   ;;  %s527_s12 = sphi %s565_s12, %s710_s12  }
   0x4   : > { %p23_p0 = scmp.ge.s32.totalorder %s22_s17, 2  ;;  %p415_p1 = scmp.ge.s32.totalorder %s543_s16, 1 }
   0x5   : > { %p158_p2 = scmp.lt.s32.totalorder %s543_s16, 5 }
   0x6   : > { %s715_s17 = smov (%p23_p0, %s22_s17), 0  ;;  %s717_s18 = smov (!%p23_p0, %s25_s18), %s539_s15 }
   0x7   : > { %p159_p3 = pnand %p415_p1, %p158_p2  ;;  %p27_p4 = scmp.ge.s32.totalorder %s717_s18, 2 }
   0x8   : > { %s416_s19 = sshll.u32 (!%p159_p3), %s527_s12, 4  ;;  %p191_p5 = scmp.lt.s32.totalorder (!%p159_p3), %s531_s13, 1  ;;  %v606_v0 = vld [vmem:[%s707_s1] ss:$0 sm:$0xff] (!%p159_p3)  ;;  %vm304_vm0 = vcmask (!%p159_p3), 31744  }
   0x9   : > { %s719_s18 = smov (%p27_p4, %s717_s18), 0  ;;  %162 = sbr.rel (%p159_p3) target bundleno = 42 (0x2a), region = 32 }
   0xa   : > { %p193_p6 = scmp.lt.s32.totalorder (!%p159_p3), %s416_s19, 31  ;;  %v615_v9 = vld [vmem:[%s708_s2] ss:$0 sm:$0xff] (!%p159_p3) }
  0x10   : > { %s721_s13 = smov (!%p191_p5, %s531_s13), 1  ;;  %s723_s19 = smov (!%p193_p6, %s416_s19), 31 }
  0x11   : > { %s417_s20 = sshll.u32 %s721_s13, 5 }
  0x12   : > { %s595_s21 = sadd.s32 %s417_s20, %s723_s19 }
  0x13   : > { %s418_s22 = sshll.u32 %s595_s21, 2  ;;  %s421_s30 = sshll.u32 %s595_s21, 3 }
  0x14   : > { %s601_s25 = scalar_lea.vmem %s706_s0, %s418_s22  ;;  %s633_s6 = scalar_lea.vmem %s709_s3, %s421_s30 }
  0x15   : > { %v427_v1 = vld [vmem:[%s601_s25] sm:$0xff]   ;;  %v458_v2 = vld [vmem:[%s601_s25 + $0x8] sm:$0xff]   ;;  %v459_v3 = vld [vmem:[%s601_s25 + $0x10] sm:$0xff]  }
  0x16   : > { %v428_v4 = vunpack.c.l.bf16 %v427_v1  ;;  %v429_v5 = vunpack.c.h.bf16 %v427_v1  ;;  %v432_v6 = vunpack.c.l.bf16 %v458_v2  ;;  %v433_v7 = vunpack.c.h.bf16 %v458_v2  ;;  %v460_v8 = vld [vmem:[%s601_s25 + $0x18] sm:$0xff]   ;;  %v461_v30 = vld [vmem:[%s601_s25 + $0x20] sm:$0xff]   ;;  %v462_v31 = vld [vmem:[%s601_s25 + $0x28] sm:$0xff]  }
  0x17   : > { %v436_v10 = vunpack.c.l.bf16 %v459_v3  ;;  %v437_v11 = vunpack.c.h.bf16 %v459_v3  ;;  %v440_v12 = vunpack.c.l.bf16 %v460_v8  ;;  %v441_v13 = vunpack.c.h.bf16 %v460_v8  ;;  %v463_v36 = vld [vmem:[%s601_s25 + $0x30] sm:$0xff]   ;;  %v464_v37 = vld [vmem:[%s601_s25 + $0x38] sm:$0xff]  }
  0x18   : > { %v249_v14 = vmul.f32 %v428_v4, %v606_v0  ;;  %v250_v15 = vmul.f32 %v429_v5, %v606_v0  ;;  %v251_v16 = vmul.f32 %v432_v6, %v606_v0  ;;  %v252_v17 = vmul.f32 %v433_v7, %v606_v0 }
  0x19   : > { %v253_v18 = vmul.f32 %v436_v10, %v606_v0  ;;  %v254_v19 = vmul.f32 %v437_v11, %v606_v0  ;;  %v255_v20 = vmul.f32 %v440_v12, %v606_v0  ;;  %v256_v21 = vmul.f32 %v441_v13, %v606_v0 }
  0x1a   : > { %v272_v22 = vadd.f32 %v615_v9, %v249_v14  ;;  %v273_v23 = vadd.f32 %v615_v9, %v250_v15  ;;  %v274_v24 = vadd.f32 %v615_v9, %v251_v16  ;;  %v275_v25 = vadd.f32 %v615_v9, %v252_v17 }
  0x1b   : > { %v276_v26 = vadd.f32 %v615_v9, %v253_v18  ;;  %v277_v27 = vadd.f32 %v615_v9, %v254_v19  ;;  %v278_v28 = vadd.f32 %v615_v9, %v255_v20  ;;  %v279_v29 = vadd.f32 %v615_v9, %v256_v21 }
  0x1c   : > { %v288_v32 = vmax.f32 %v272_v22, 0.0  ;;  %v289_v33 = vmax.f32 %v273_v23, 0.0  ;;  %v290_v34 = vmax.f32 %v274_v24, 0.0  ;;  %v291_v35 = vmax.f32 %v275_v25, 0.0 }
  0x1d   : > { %v292_v38 = vmax.f32 %v276_v26, 0.0  ;;  %v293_v39 = vmax.f32 %v277_v27, 0.0  ;;  %v294_v40 = vmax.f32 %v278_v28, 0.0  ;;  %v295_v41 = vmax.f32 %v279_v29, 0.0 }
  0x1e   : > { %305 = vst.msk [vmem:[%s633_s6] sm:$0xff] %vm304_vm0, %v288_v32  ;;  %306 = vst.msk [vmem:[%s633_s6 + $0x8] sm:$0xff] %vm304_vm0, %v289_v33  ;;  %v444_v42 = vunpack.c.l.bf16 %v461_v30  ;;  %v445_v43 = vunpack.c.h.bf16 %v461_v30  ;;  %v448_v44 = vunpack.c.l.bf16 %v462_v31  ;;  %v449_v45 = vunpack.c.h.bf16 %v462_v31 }
  0x1f   : > { %307 = vst.msk [vmem:[%s633_s6 + $0x10] sm:$0xff] %vm304_vm0, %v290_v34  ;;  %308 = vst.msk [vmem:[%s633_s6 + $0x18] sm:$0xff] %vm304_vm0, %v291_v35  ;;  %v452_v46 = vunpack.c.l.bf16 %v463_v36  ;;  %v453_v47 = vunpack.c.h.bf16 %v463_v36  ;;  %v456_v48 = vunpack.c.l.bf16 %v464_v37  ;;  %v457_v49 = vunpack.c.h.bf16 %v464_v37 }
  0x20   : > { %309 = vst.msk [vmem:[%s633_s6 + $0x20] sm:$0xff] %vm304_vm0, %v292_v38  ;;  %310 = vst.msk [vmem:[%s633_s6 + $0x28] sm:$0xff] %vm304_vm0, %v293_v39  ;;  %v257_v50 = vmul.f32 %v444_v42, %v606_v0  ;;  %v258_v51 = vmul.f32 %v445_v43, %v606_v0  ;;  %v259_v52 = vmul.f32 %v448_v44, %v606_v0 }
  0x21   : > { %311 = vst.msk [vmem:[%s633_s6 + $0x30] sm:$0xff] %vm304_vm0, %v294_v40  ;;  %312 = vst.msk [vmem:[%s633_s6 + $0x38] sm:$0xff] %vm304_vm0, %v295_v41  ;;  %v260_v53 = vmul.f32 %v449_v45, %v606_v0  ;;  %v261_v54 = vmul.f32 %v452_v46, %v606_v0  ;;  %v262_v55 = vmul.f32 %v453_v47, %v606_v0 }
  0x22   : > { %v263_v56 = vmul.f32 %v456_v48, %v606_v0  ;;  %v264_v57 = vmul.f32 %v457_v49, %v606_v0  ;;  %v280_v58 = vadd.f32 %v615_v9, %v257_v50  ;;  %v281_v59 = vadd.f32 %v615_v9, %v258_v51 }
  0x23   : > { %v282_v60 = vadd.f32 %v615_v9, %v259_v52  ;;  %v283_v61 = vadd.f32 %v615_v9, %v260_v53  ;;  %v284_v62 = vadd.f32 %v615_v9, %v261_v54  ;;  %v285_v63 = vadd.f32 %v615_v9, %v262_v55 }
  0x24   : > { %v286_v0 = vadd.f32 %v615_v9, %v263_v56  ;;  %v287_v1 = vadd.f32 %v615_v9, %v264_v57  ;;  %v296_v2 = vmax.f32 %v280_v58, 0.0  ;;  %v297_v3 = vmax.f32 %v281_v59, 0.0 }
  0x25   : > { %v298_v4 = vmax.f32 %v282_v60, 0.0  ;;  %v299_v5 = vmax.f32 %v283_v61, 0.0  ;;  %v300_v6 = vmax.f32 %v284_v62, 0.0  ;;  %v301_v7 = vmax.f32 %v285_v63, 0.0 }
  0x26   : > { %v302_v8 = vmax.f32 %v286_v0, 0.0  ;;  %v303_v10 = vmax.f32 %v287_v1, 0.0  ;;  %313 = vst.msk [vmem:[%s633_s6 + $0x40] sm:$0xff] %vm304_vm0, %v296_v2  ;;  %314 = vst.msk [vmem:[%s633_s6 + $0x48] sm:$0xff] %vm304_vm0, %v297_v3 }
  0x27   : > { %315 = vst.msk [vmem:[%s633_s6 + $0x50] sm:$0xff] %vm304_vm0, %v298_v4  ;;  %316 = vst.msk [vmem:[%s633_s6 + $0x58] sm:$0xff] %vm304_vm0, %v299_v5 }
  0x28   : > { %317 = vst.msk [vmem:[%s633_s6 + $0x60] sm:$0xff] %vm304_vm0, %v300_v6  ;;  %318 = vst.msk [vmem:[%s633_s6 + $0x68] sm:$0xff] %vm304_vm0, %v301_v7 }
  0x29   : > { %319 = vst.msk [vmem:[%s633_s6 + $0x70] sm:$0xff] %vm304_vm0, %v302_v8  ;;  %320 = vst.msk [vmem:[%s633_s6 + $0x78] sm:$0xff] %vm304_vm0, %v303_v10 }
  0x2a PF: > { %s13_s16 = sadd.s32 1, %s543_s16   ;;  %s710_s12 = smov %s535_s14 }
  0x2b   : > { %p10_p7 = scmp.ge.s32.totalorder %s13_s16, 6   ;;  %s711_s13 = smov %s539_s15 }
  0x2c   : > { %s712_s14 = smov %s715_s17  ;;  %s713_s15 = smov %s719_s18 }
  0x2d   :  { %12 = sbr.rel (!%p10_p7) target bundleno = 3 (0x3), region = 62 }

// kernel: conv_block.2
= control target key start
LH: loop header
LB: loop body
LE: loop exit
PB: predicated region body
PF: predicated region fallthrough
CT: control target
= control target key end

     0   :  { %s1862_s24 = smov 0   ;;  %s1864_s25 = smov 0   ;;  %s2479_s0 = inlined_call_operand.vmem [shape: f32[2,16,16,128], index: 0, kind: input, shape index: {}, may-alias: {0,1,2}]   ;;  %s2480_s1 = inlined_call_operand.vmem [shape: f32[2,16,16,128], index: 1, kind: input, shape index: {}, may-alias: {0,1,2}]   ;;  %s2481_s2 = inlined_call_operand.vmem [shape: f32[2,16,16,128], index: 2, kind: input, shape index: {}, may-alias: {0,1,2}]   ;;  %s2482_s3 = inlined_call_operand.vmem [shape: f32[9,128], index: 3, kind: input, shape index: {}]   ;;  %s2483_s4 = inlined_call_operand.vmem [shape: bf16[128,128], index: 4, kind: input, shape index: {}]   ;;  %s2484_s5 = inlined_call_operand.vmem [shape: f32[1,128], index: 5, kind: input, shape index: {}]   ;;  %s2485_s6 = inlined_call_operand.vmem [shape: bf16[2,256,128], index: 6, kind: output, shape index: {0}]   ;;  %s2486_s7 = inlined_call_operand.vmem [shape: f32[2,2,2,128], index: 7, kind: output, shape index: {1}]  }
   0x1   :  { %s1866_s26 = smov 0   ;;  %s1868_s27 = smov 0  }
   0x2   :  { %s1870_s28 = smov 0  }
   0x3 LB: > { %s27_s29 = sadd.s32 1, %s1811_s26  ;;  %s30_s30 = sadd.s32 1, %s1815_s27  ;;  %s1819_s28 = sphi %s1870_s28, %s18_s28   ;;  %s1815_s27 = sphi %s1868_s27, %s2549_s27   ;;  %s1811_s26 = sphi %s1866_s26, %s2548_s26   ;;  %s1807_s25 = sphi %s1864_s25, %s2547_s25   ;;  %s1803_s24 = sphi %s1862_s24, %s2546_s24  }
   0x4   : > { %p28_p0 = scmp.ge.s32.totalorder %s27_s29, 2  ;;  %p1528_p1 = scmp.ge.s32.totalorder %s1819_s28, 1 }
   0x5   : > { %p328_p2 = scmp.lt.s32.totalorder %s1819_s28, 5 }
   0x6   : > { %s2551_s29 = smov (%p28_p0, %s27_s29), 0  ;;  %s2553_s30 = smov (!%p28_p0, %s30_s30), %s1815_s27 }
   0x7   : > { %p329_p3 = pnand %p1528_p1, %p328_p2  ;;  %p32_p4 = scmp.ge.s32.totalorder %s2553_s30, 2 }
   0x9   : > { %s2555_s30 = smov (%p32_p4, %s2553_s30), 0  ;;  %332 = sbr.rel (%p329_p3) target bundleno = 353 (0x161), region = 44 }
  0x10   : > { %v1761_v0 = vld [vmem:[%s2483_s4] sm:$0xff]   ;;  %s1898_s10 = sshll.u32 %s1803_s24, 3  ;;  %v1762_v1 = vld [vmem:[%s2483_s4 + $0x8] sm:$0xff]   ;;  %p404_p5 = scmp.lt.s32.totalorder %s1807_s25, 1  ;;  %v1763_v2 = vld [vmem:[%s2483_s4 + $0x10] sm:$0xff]   ;;  %v1821_v4 = vmov 0.0  }
  0x11   : > { %1672 = vmatprep.subr.bf16.mxu0 %v1761_v0  ;;  %1704 = vmatprep.subr.bf16.mxu1 %v1761_v0  ;;  %p406_p6 = scmp.lt.s32.totalorder %s1898_s10, 15  ;;  %s1915_s19 = sadd.s32 4294967295, %s1898_s10  ;;  %v1920_v3 = vld [vmem:[%s2483_s4 + $0x18] sm:$0xff]   ;;  %467 = vst [vmem:[#allocation2] sm:$0x1] %v1821_v4  ;;  %v1954_v12 = vld [vmem:[%s2483_s4 + $0x20] sm:$0xff]  }
  0x12   : > { %1673 = vmatpush3.bf16.msra.mxu0 %v1761_v0  ;;  %1712 = vmatpush3.bf16.msra.mxu1 %v1761_v0  ;;  %s2557_s25 = smov (!%p404_p5, %s1807_s25), 1  ;;  %p416_p7 = scmp.gt.s32.totalorder %s1915_s19, 0  ;;  %468 = vst [vmem:[#allocation2 + $0x18] sm:$0x1] %v1821_v4  ;;  %469 = vst [vmem:[#allocation2 + $0x30] sm:$0x1] %v1821_v4 }
  0x13   : > { %1674 = vmatprep.subr.bf16.mxu0 %v1762_v1  ;;  %1705 = vmatprep.subr.bf16.mxu1 %v1762_v1  ;;  %s407_s15 = scalar_select %p406_p6, %s1898_s10, 15  ;;  %477 = vst [vmem:[#allocation2 + $0x11] sm:$0x1] %v1821_v4  ;;  %478 = vst [vmem:[#allocation2 + $0x29] sm:$0x1] %v1821_v4  ;;  %v1989_v22 = vld [vmem:[%s2483_s4 + $0x28] sm:$0xff]  }
  0x14   : > { %s1911_s16 = sshll.u32 %s2557_s25, 5  ;;  %p1535_p8 = scmp.lt.s32.totalorder %s1915_s19, 15  ;;  %479 = vst [vmem:[#allocation2 + $0x41] sm:$0x1] %v1821_v4  ;;  %v1932_v5 = vld [vmem:[%s2482_s3 + $0x1] ss:$0 sm:$0xff] }
  0x15   : > { %s1530_s17 = sshll.u32 %s407_s15, 1  ;;  %2507 = vst [vmem:[#allocation3_spill] sm:$0xff] %v1932_v5  ;;  %470 = vst [vmem:[#allocation2 + $0x48] sm:$0x1] %v1821_v4  ;;  %p520_p9 = scmp.gt.s32.totalorder %s1803_s24, 0  ;;  %v2113_v53 = vld [vmem:[%s2483_s4 + $0x30] sm:$0xff]  }
  0x16   : > { %1675 = vmatpush3.bf16.msra.mxu0 %v1762_v1  ;;  %1713 = vmatpush3.bf16.msra.mxu1 %v1762_v1  ;;  %s410_s18 = sadd.s32 %s1911_s16, %s1530_s17  ;;  %471 = vst [vmem:[#allocation2 + $0x60] sm:$0x1] %v1821_v4  ;;  %472 = vst [vmem:[#allocation2 + $0x78] sm:$0x1] %v1821_v4  ;;  %v1945_v10 = vld [vmem:[%s2482_s3 + $0x4] ss:$0 sm:$0xff] }
  0x17   : > { %1676 = vmatprep.subr.bf16.mxu0 %v1763_v2  ;;  %1706 = vmatprep.subr.bf16.mxu1 %v1763_v2  ;;  %s1532_s22 = sshll.u32 %s410_s18, 3  ;;  %473 = vst [vmem:[#allocation2 + $0x90] sm:$0x1] %v1821_v4  ;;  %474 = vst [vmem:[#allocation2 + $0xa8] sm:$0x1] %v1821_v4  ;;  %s432_s12 = sadd.s32 8, %s1898_s10 }
  0x18   : > { %s1926_s9 = scalar_lea.vmem %s2479_s0, %s1532_s22  ;;  %475 = vst [vmem:[#allocation2 + $0xc0] sm:$0x1] %v1821_v4  ;;  %476 = vst [vmem:[#allocation2 + $0xd8] sm:$0x1] %v1821_v4  ;;  %v1975_v18 = vld [vmem:[%s2482_s3 + $0x7] ss:$0 sm:$0xff] }
  0x19   : > { %480 = vst [vmem:[#allocation2 + $0x59] sm:$0x1] %v1821_v4  ;;  %481 = vst [vmem:[#allocation2 + $0x71] sm:$0x1] %v1821_v4  ;;  %s417_s13 = scalar_select %p416_p7, %s1915_s19, 0  ;;  %v487_v6 = vld [vmem:[%s1926_s9] sm:$0xff] }
  0x1a   : > { %482 = vst [vmem:[#allocation2 + $0x89] sm:$0x1] %v1821_v4  ;;  %483 = vst [vmem:[#allocation2 + $0xa1] sm:$0x1] %v1821_v4  ;;  %v488_v7 = vld [vmem:[%s1926_s9 + $0x8] sm:$0xff]  ;;  %v489_v8 = vld [vmem:[%s1926_s9 + $0x10] sm:$0xff]  ;;  %1677 = vmatpush3.bf16.msra.mxu0 %v1763_v2  ;;  %1714 = vmatpush3.bf16.msra.mxu1 %v1763_v2  ;;  %v1948_v11 = vmul.f32 %v1932_v5, %v487_v6  ;;  %v1960_v13 = vmul.f32 %v1945_v10, %v487_v6 }
  0x1b   : > { %484 = vst [vmem:[#allocation2 + $0xb9] sm:$0x1] %v1821_v4  ;;  %485 = vst [vmem:[#allocation2 + $0xd1] sm:$0x1] %v1821_v4  ;;  %v490_v9 = vld [vmem:[%s1926_s9 + $0x18] sm:$0xff]  ;;  %1678 = vmatprep.subr.bf16.mxu0 %v1920_v3  ;;  %1707 = vmatprep.subr.bf16.mxu1 %v1920_v3  ;;  %s2559_s13 = smov (!%p1535_p8, %s417_s13), 15  ;;  %v1964_v15 = vmul.f32 %v1932_v5, %v488_v7  ;;  %v1967_v16 = vmul.f32 %v1932_v5, %v489_v8 }
  0x1c   : > { %486 = vst [vmem:[#allocation2 + $0xe9] sm:$0x1] %v1821_v4  ;;  %504 = vst [vmem:[#allocation2 + $0x19] sm:$0xff] %v487_v6  ;;  %v491_v14 = vld [vmem:[%s1926_s9 + $0x20] sm:$0xff]  ;;  %v1970_v17 = vmul.f32 %v1945_v10, %v488_v7  ;;  %v1978_v19 = vmul.f32 %v1945_v10, %v489_v8  ;;  %v1981_v20 = vmul.f32 %v1945_v10, %v490_v9  ;;  %s1540_s23 = sshll.u32 %s2559_s13, 1  ;;  %v492_v26 = vld [vmem:[%s1926_s9 + $0x28] sm:$0xff] }
  0x1d   : > { %505 = vst [vmem:[#allocation2 + $0x21] sm:$0xff] %v488_v7  ;;  %506 = vst [vmem:[#allocation2 + $0x31] sm:$0xff] %v489_v8  ;;  %v1984_v21 = vmul.f32 %v1932_v5, %v490_v9  ;;  %v1994_v23 = vld [vmem:[%s2482_s3 + $0x3] ss:$0 sm:$0xff]  ;;  %v1997_v24 = vmul.f32 %v1975_v18, %v489_v8  ;;  %v2000_v25 = vmul.f32 %v1975_v18, %v490_v9  ;;  %v493_v27 = vld [vmem:[%s1926_s9 + $0x30] sm:$0xff]  ;;  %s424_s13 = sadd.s32 %s1540_s23, %s1911_s16  ;;  %p2106_p10 = scmp.lt.s32.totalorder %s432_s12, 15 }
  0x1e   : > { %2508 = vst [vmem:[#allocation4_spill] sm:$0xff] %v1945_v10  ;;  %507 = vst [vmem:[#allocation2 + $0x39] sm:$0xff] %v490_v9  ;;  %v494_v28 = vld [vmem:[%s1926_s9 + $0x38] sm:$0xff]  ;;  %v2006_v29 = vmul.f32 %v1945_v10, %v491_v14  ;;  %v2009_v30 = vmul.f32 %v1932_v5, %v491_v14  ;;  %1679 = vmatpush3.bf16.msra.mxu0 %v1920_v3  ;;  %1715 = vmatpush3.bf16.msra.mxu1 %v1920_v3  ;;  %v2018_v31 = vld [vmem:[%s2482_s3] ss:$0 sm:$0xff]  ;;  %s1542_s20 = sshll.u32 %s424_s13, 3 }
  0x1f   : > { %2509 = vst [vmem:[#allocation5_spill] sm:$0xff] %v1975_v18  ;;  %508 = vst [vmem:[#allocation2 + $0x49] sm:$0xff] %v491_v14  ;;  %v2023_v32 = vld [vmem:[%s2482_s3 + $0x5] ss:$0 sm:$0xff]  ;;  %v2026_v33 = vmul.f32 %v1975_v18, %v491_v14  ;;  %v2029_v34 = vmul.f32 %v1975_v18, %v492_v26  ;;  %v2032_v35 = vmul.f32 %v1945_v10, %v492_v26  ;;  %v2038_v37 = vld [vmem:[%s1926_s9 + $0x48] sm:$0xff]  ;;  %1680 = vmatprep.subr.bf16.mxu0 %v1954_v12  ;;  %s2069_s22 = scalar_lea.vmem %s2480_s1, %s1542_s20  ;;  %s2561_s12 = smov (!%p2106_p10, %s432_s12), 15 }
  0x20   : > { %509 = vst [vmem:[#allocation2 + $0x51] sm:$0xff] %v492_v26  ;;  %510 = vst [vmem:[#allocation2 + $0x61] sm:$0xff] %v493_v27  ;;  %v2035_v36 = vld [vmem:[%s1926_s9 + $0x40] sm:$0xff]  ;;  %v2041_v38 = vld [vmem:[%s1926_s9 + $0x50] sm:$0xff]  ;;  %1708 = vmatprep.subr.bf16.mxu1 %v1954_v12  ;;  %v2046_v39 = vmul.f32 %v1975_v18, %v493_v27  ;;  %v2049_v40 = vmul.f32 %v1975_v18, %v494_v28  ;;  %v2054_v41 = vmul.f32 %v1932_v5, %v492_v26  ;;  %s1770_s18 = scalar_select %p520_p9, 255, 0 }
  0x21   : > { %511 = vst [vmem:[#allocation2 + $0x69] sm:$0xff] %v494_v28  ;;  %2510 = vst [vmem:[#allocation6_spill] sm:$0xff] %v2035_v36  ;;  %v2057_v42 = vld [vmem:[%s1926_s9 + $0x58] sm:$0xff]  ;;  %v2061_v43 = vld [vmem:[%s1926_s9 + $0x60] sm:$0xff]  ;;  %v2082_v47 = vmul.f32 %v1945_v10, %v493_v27  ;;  %v2085_v48 = vmul.f32 %v1945_v10, %v494_v28  ;;  %v2089_v49 = vmul.f32 %v1975_v18, %v2035_v36  ;;  %p460_p11 = scmp.lt.s32.totalorder %s1803_s24, 1  ;;  %s2563_s12 = smov (!%p2106_p10, %s2561_s12), 15 }
  0x22   : > { %2511 = vst [vmem:[#allocation7_spill] sm:$0xff] %v2038_v37  ;;  %2512 = vst [vmem:[#allocation8_spill] sm:$0xff] %v2041_v38  ;;  %v2064_v44 = vld [vmem:[%s1926_s9 + $0x68] sm:$0xff]  ;;  %v2074_v45 = vld [vmem:[%s2482_s3 + $0x2] ss:$0 sm:$0xff]  ;;  %v2093_v50 = vmul.f32 %v1975_v18, %v2038_v37  ;;  %v2123_v57 = vmul.f32 %v1932_v5, %v493_v27  ;;  %v2126_v58 = vmul.f32 %v1932_v5, %v494_v28  ;;  %1681 = vmatpush3.bf16.msra.mxu0 %v1954_v12  ;;  %s1547_s21 = sshll.u32 %s2563_s12, 1 }
  0x23   : > { %512 = vst [vmem:[#allocation2 + $0x79] sm:$0xff] %v2035_v36  ;;  %513 = vst [vmem:[#allocation2 + $0x81] sm:$0xff] %v2038_v37  ;;  %v2079_v46 = vld [vmem:[%s2482_s3 + $0x6] ss:$0 sm:$0xff]  ;;  %v2099_v51 = vld [vmem:[%s1926_s9 + $0x70] sm:$0xff]  ;;  %v2130_v59 = vmul.f32 %v1945_v10, %v2035_v36  ;;  %v2134_v60 = vmul.f32 %v1945_v10, %v2038_v37  ;;  %1716 = vmatpush3.bf16.msra.mxu1 %v1954_v12  ;;  %v2148_v2 = vmul.f32 %v1975_v18, %v2041_v38  ;;  %s1550_s14 = sshll.u32 %s1803_s24, 4 }
  0x24   : > { %2513 = vst [vmem:[#allocation9_spill] sm:$0xff] %v2057_v42  ;;  %514 = vst [vmem:[#allocation2 + $0x91] sm:$0xff] %v2041_v38  ;;  %v2102_v52 = vld [vmem:[%s1926_s9 + $0x78] sm:$0xff]  ;;  %v701_v55 = vld [vmem:[#allocation2 + $0x20] sm:$0xff]  ;;  %1682 = vmatprep.subr.bf16.mxu0 %v1989_v22  ;;  %1709 = vmatprep.subr.bf16.mxu1 %v1989_v22  ;;  %s1776_s13 = scalar_select %p460_p11, 255, 0 }
  0x25   : > { %2514 = vst [vmem:[#allocation10_spill] sm:$0xff] %v2061_v43  ;;  %2515 = vst [vmem:[#allocation11_spill] sm:$0xff] %v2064_v44  ;;  %v700_v54 = vld [vmem:[#allocation2 + $0x18] sm:$0xff]  ;;  %v2120_v56 = vld [vmem:[%s2482_s3 + $0x8] ss:$0 sm:$0xff]  ;;  %v2144_v62 = vmul.f32 %v1994_v23, %v701_v55  ;;  %p451_p12 = scmp.lt.s32.totalorder %s1550_s14, 31 }
  0x26   : > { %2516 = vst [vmem:[#allocation12_spill] sm:$0xff] %v2089_v49  ;;  %2517 = vst [vmem:[#allocation13_spill] sm:$0xff] %v2093_v50  ;;  %v2141_v61 = vmul.f32 %v1994_v23, %v700_v54  ;;  %v806_v63 = vld [vmem:[#allocation2 + $0x1a] sm:$0xff]  ;;  %v807_v0 = vld [vmem:[#allocation2 + $0x22] sm:$0xff]  ;;  %v564_v12 = vmul.f32 %v2018_v31, %v700_v54  ;;  %v565_v54 = vmul.f32 %v2018_v31, %v701_v55  ;;  %1683 = vmatpush3.bf16.msra.mxu0 %v1989_v22  ;;  %s2567_s24 = smov (!%p460_p11, %s1803_s24), 1  ;;  %s1553_s9 = sshll.u32 %s2557_s25, 1 }
  0x27   : > { %515 = vst [vmem:[#allocation2 + $0x99] sm:$0xff] %v2057_v42  ;;  %516 = vst [vmem:[#allocation2 + $0xa9] sm:$0xff] %v2061_v43  ;;  %v860_v1 = vld [vmem:[#allocation2 + $0x30] sm:$0xff]  ;;  %v1771_v3 = vld [vmem:[%s2069_s22] sm:%s1770_s18]  ;;  %v2153_v4 = vmul.f32 %v2023_v32, %v806_v63  ;;  %v2156_v6 = vmul.f32 %v2023_v32, %v807_v0  ;;  %v671_v43 = vmul.f32 %v2074_v45, %v807_v0  ;;  %1684 = vmatprep.subr.bf16.mxu0 %v2113_v53  ;;  %s2565_s14 = smov (!%p451_p12, %s1550_s14), 31  ;;  %vm1253_vm0 = vcmask 1040384  }
  0x28   : > { %517 = vst [vmem:[#allocation2 + $0xb1] sm:$0xff] %v2064_v44  ;;  %2518 = vst [vmem:[#allocation14_spill] sm:$0xff] %v2099_v51  ;;  %v861_v7 = vld [vmem:[#allocation2 + $0x38] sm:$0xff]  ;;  %v2159_v8 = vmul.f32 %v2079_v46, %v860_v1  ;;  %v1774_v14 = vld [vmem:[%s2069_s22 + $0x8] sm:%s1770_s18]  ;;  %v2170_v26 = vmul.f32 %v1771_v3, %v1932_v5  ;;  %v633_v44 = vadd.f32 %v1948_v11, %v564_v12  ;;  %1717 = vmatpush3.bf16.msra.mxu1 %v1989_v22  ;;  %s441_s22 = sadd.s32 %s1547_s21, %s1911_s16  ;;  %s454_s15 = sadd.s32 %s1911_s16, %s2565_s14 }
  0x29   : > { %2519 = vst [vmem:[#allocation15_spill] sm:$0xff] %v2102_v52  ;;  %2521 = vst [vmem:[#allocation16_spill] sm:$0xff] %v2123_v57  ;;  %v966_v9 = vld [vmem:[#allocation2 + $0x32] sm:$0xff]  ;;  %v2173_v27 = vmul.f32 %v2079_v46, %v861_v7  ;;  %v967_v28 = vld [vmem:[#allocation2 + $0x3a] sm:$0xff]  ;;  %v634_v55 = vadd.f32 %v1964_v15, %v565_v54  ;;  %v723_v10 = vmul.f32 %v1994_v23, %v860_v1  ;;  %1710 = vmatprep.subr.bf16.mxu1 %v2113_v53  ;;  %s1549_s12 = sshll.u32 %s441_s22, 3  ;;  %s1552_s20 = sshll.u32 %s454_s15, 2 }
  0x2a   : > { %2522 = vst [vmem:[#allocation17_spill] sm:$0xff] %v2126_v58  ;;  %2523 = vst [vmem:[#allocation18_spill] sm:$0xff] %v2130_v59  ;;  %v724_v38 = vmul.f32 %v1994_v23, %v861_v7  ;;  %v2195_v37 = vld [vmem:[#allocation2 + $0x48] sm:$0xff]  ;;  %v2201_v11 = vld [vmem:[%s2483_s4 + $0x38] sm:$0xff]   ;;  %v829_v0 = vmul.f32 %v2023_v32, %v966_v9  ;;  %v830_v12 = vmul.f32 %v2023_v32, %v967_v28  ;;  %1685 = vmatpush3.bf16.msra.mxu0 %v2113_v53  ;;  %s2237_s11 = scalar_lea.vmem %s2481_s2, %s1549_s12  ;;  %s2434_s16 = scalar_lea.vmem %s2485_s6, %s1552_s20 }
  0x2b   : > { %2524 = vst [vmem:[#allocation19_spill] sm:$0xff] %v2134_v60  ;;  %518 = vst [vmem:[#allocation2 + $0xc1] sm:$0xff] %v2099_v51  ;;  %v2182_v51 = vmul.f32 %v2120_v56, %v967_v28  ;;  %v2205_v15 = vld [vmem:[#allocation2 + $0x50] sm:$0xff]  ;;  %v687_v60 = vadd.f32 %v671_v43, %v634_v55  ;;  %v567_v43 = vmul.f32 %v2018_v31, %v861_v7  ;;  %1686 = vmatprep.subr.bf16.mxu0 %v2201_v11  ;;  %s463_s21 = sadd.s32 %s1553_s9, %s2567_s24 }
  0x2c   : > { %519 = vst [vmem:[#allocation2 + $0xc9] sm:$0xff] %v2102_v52  ;;  %2525 = vst [vmem:[#allocation20_spill] sm:$0xff] %v2148_v2  ;;  %v2176_v52 = vmul.f32 %v2120_v56, %v966_v9  ;;  %v616_v2 = vmul.f32 %v1774_v14, %v1932_v5  ;;  %v2209_v54 = vld [vmem:[#allocation2 + $0x4a] sm:$0xff]  ;;  %v884_v59 = vmul.f32 %v2079_v46, %v2205_v15  ;;  %v2213_v5 = vld [vmem:[#allocation2 + $0x52] sm:$0xff]  ;;  %1718 = vmatpush3.bf16.msra.mxu1 %v2113_v53  ;;  %s1554_s22 = sshll.u32 %s463_s21, 1 }
  0x2d   : > { %528 = vst [vmem:[#allocation2 + $0x1] sm:$0xff] %v1771_v3  ;;  %529 = vst [vmem:[#allocation2 + $0x9] sm:$0xff] %v1774_v14  ;;  %v670_v3 = vmul.f32 %v2074_v45, %v806_v63  ;;  %v883_v14 = vmul.f32 %v2079_v46, %v2195_v37  ;;  %v2224_v18 = vmul.f32 %v2120_v56, %v2213_v5  ;;  %1711 = vmatprep.subr.bf16.mxu1 %v2201_v11  ;;  %s465_s8 = scalar_lea.vmem %s2486_s7, %s1554_s22 }
  0x2e   : > { %2526 = vst [vmem:[#allocation21_spill] sm:$0xff] %v2182_v51  ;;  %v672_v55 = vmul.f32 %v2074_v45, %v966_v9  ;;  %v740_v42 = vadd.f32 %v724_v38, %v687_v60  ;;  %v831_v38 = vmul.f32 %v2023_v32, %v2209_v54  ;;  %1687 = vmatpush3.bf16.msra.mxu0 %v2201_v11  ;;  %v2264_v51 = vld [vmem:[%s2237_s11] sm:%s1776_s13] }
  0x2f   : > { %v686_v63 = vadd.f32 %v670_v3, %v633_v44  ;;  %v2217_v44 = vmul.f32 %v2120_v56, %v2209_v54  ;;  %v566_v3 = vmul.f32 %v2018_v31, %v860_v1  ;;  %v673_v1 = vmul.f32 %v2074_v45, %v967_v28  ;;  %539 = vst [vmem:[#allocation2 + $0xd9] sm:$0xff] %v2264_v51 }
  0x30   : > { %v793_v49 = vadd.f32 %v1981_v20, %v740_v42  ;;  %1719 = vmatpush3.bf16.msra.mxu1 %v2201_v11 }
  0x31   : > { %v739_v36 = vadd.f32 %v723_v10, %v686_v63  ;;  %v635_v22 = vadd.f32 %v1967_v16, %v566_v3  ;;  %v725_v10 = vmul.f32 %v1994_v23, %v2195_v37  ;;  %v636_v63 = vadd.f32 %v1984_v21, %v567_v43 }
  0x32   : > { %v726_v16 = vmul.f32 %v1994_v23, %v2205_v15  ;;  %v832_v21 = vmul.f32 %v2023_v32, %v2213_v5  ;;  %v846_v42 = vadd.f32 %v830_v12, %v793_v49 }
  0x33   : > { %v792_v9 = vadd.f32 %v1978_v19, %v739_v36  ;;  %v688_v19 = vadd.f32 %v672_v55, %v635_v22  ;;  %v689_v53 = vadd.f32 %v673_v1, %v636_v63  ;;  %v2261_v22 = vld [vmem:[#allocation2 + $0x68] sm:$0xff]  ;;  %v568_v63 = vmul.f32 %v2018_v31, %v2195_v37 }
  0x34   : > { %v541_v7 = vld [vmem:[#allocation2] sm:$0xff]  ;;  %v542_v60 = vld [vmem:[#allocation2 + $0x8] sm:$0xff] }
  0x35   : > { %v562_v28 = vmul.f32 %v2018_v31, %v541_v7  ;;  %v647_v3 = vld [vmem:[#allocation2 + $0x2] sm:$0xff]  ;;  %v648_v50 = vld [vmem:[#allocation2 + $0xa] sm:$0xff]  ;;  %v563_v36 = vmul.f32 %v2018_v31, %v542_v60  ;;  %v845_v57 = vadd.f32 %v829_v0, %v792_v9  ;;  %v741_v55 = vadd.f32 %v725_v10, %v688_v19 }
  0x36   : > { %v668_v43 = vmul.f32 %v2074_v45, %v647_v3  ;;  %v669_v58 = vmul.f32 %v2074_v45, %v648_v50  ;;  %v2256_v7 = vld [vmem:[#allocation2 + $0x60] sm:$0xff]  ;;  %v2267_v60 = vld [vmem:[%s2237_s11 + $0x8] sm:%s1776_s13]  ;;  %v886_v9 = vmul.f32 %v2079_v46, %v2261_v22  ;;  %v742_v12 = vadd.f32 %v726_v16, %v689_v53 }
  0x37   : > { %v631_v20 = vadd.f32 %v2170_v26, %v562_v28  ;;  %v632_v3 = vadd.f32 %v616_v2, %v563_v36  ;;  %v899_v50 = vadd.f32 %v883_v14, %v845_v57  ;;  %v885_v0 = vmul.f32 %v2079_v46, %v2256_v7  ;;  %540 = vst [vmem:[#allocation2 + $0xe1] sm:$0xff] %v2267_v60  ;;  %v970_v10 = vld [vmem:[#allocation2 + $0x62] sm:$0xff] }
  0x38   : > { %v900_v26 = vadd.f32 %v884_v59, %v846_v42  ;;  %v794_v1 = vadd.f32 %v2006_v29, %v741_v55  ;;  %v991_v14 = vmul.f32 %v2120_v56, %v970_v10  ;;  %v795_v59 = vadd.f32 %v2032_v35, %v742_v12 }
  0x39   : > { %v684_v49 = vadd.f32 %v668_v43, %v631_v20  ;;  %v685_v2 = vadd.f32 %v669_v58, %v632_v3  ;;  %v952_v57 = vadd.f32 %v2026_v33, %v899_v50  ;;  %v569_v33 = vmul.f32 %v2018_v31, %v2205_v15 }
  0x3a   : > { %v953_v19 = vadd.f32 %v2029_v34, %v900_v26  ;;  %v847_v16 = vadd.f32 %v831_v38, %v794_v1  ;;  %v637_v58 = vadd.f32 %v2009_v30, %v568_v63  ;;  %v971_v38 = vld [vmem:[#allocation2 + $0x6a] sm:$0xff]  ;;  %v675_v15 = vmul.f32 %v2074_v45, %v2213_v5  ;;  %v972_v1 = vld [vmem:[#allocation2 + $0x7a] sm:$0xff] }
  0x3b   : > { %v737_v28 = vadd.f32 %v2141_v61, %v684_v49  ;;  %v738_v29 = vadd.f32 %v2144_v62, %v685_v2  ;;  %v2286_v36 = vadd.f32 %v2217_v44, %v952_v57  ;;  %v848_v61 = vadd.f32 %v832_v21, %v795_v59  ;;  %v2527_v63 = vld [vmem:[#allocation21_spill] sm:$0xff] }
  0x3c   : > { %v2293_v37 = vadd.f32 %v2224_v18, %v953_v19  ;;  %v901_v34 = vadd.f32 %v885_v0, %v847_v16  ;;  %v638_v62 = vadd.f32 %v2054_v41, %v569_v33  ;;  %v674_v44 = vmul.f32 %v2074_v45, %v2209_v54  ;;  %v973_v33 = vld [vmem:[#allocation2 + $0x82] sm:$0xff] }
  0x3d   : > { %v790_v11 = vadd.f32 %v1960_v13, %v737_v28  ;;  %v791_v35 = vadd.f32 %v1970_v17, %v738_v29  ;;  %v902_v43 = vadd.f32 %v886_v9, %v848_v61  ;;  %v992_v18 = vmul.f32 %v2120_v56, %v971_v38  ;;  %v866_v9 = vld [vmem:[#allocation2 + $0x78] sm:$0xff] }
  0x3e   : > { %v954_v13 = vadd.f32 %v2046_v39, %v901_v34  ;;  %v690_v20 = vadd.f32 %v674_v44, %v637_v58  ;;  %v691_v17 = vadd.f32 %v675_v15, %v638_v62  ;;  %v727_v41 = vmul.f32 %v1994_v23, %v2256_v7  ;;  %v2528_v58 = vld [vmem:[#allocation16_spill] sm:$0xff] }
  0x3f   : > { %v843_v30 = vadd.f32 %v2153_v4, %v790_v11  ;;  %v844_v21 = vadd.f32 %v2156_v6, %v791_v35  ;;  %v955_v54 = vadd.f32 %v2049_v40, %v902_v43  ;;  %v728_v5 = vmul.f32 %v1994_v23, %v2261_v22  ;;  %v867_v40 = vld [vmem:[#allocation2 + $0x80] sm:$0xff]  ;;  %v869_v43 = vld [vmem:[#allocation2 + $0x98] sm:$0xff] }
  0x40   : > { %v1007_v53 = vadd.f32 %v991_v14, %v954_v13  ;;  %v1020_v39 = vpack.c.bf16 %v2293_v37, %v2286_v36  ;;  %v743_v55 = vadd.f32 %v727_v41, %v690_v20  ;;  %v833_v6 = vmul.f32 %v2023_v32, %v970_v10  ;;  %v2529_v37 = vld [vmem:[#allocation17_spill] sm:$0xff] }
  0x41   : > { %v897_v42 = vadd.f32 %v2159_v8, %v843_v30  ;;  %v898_v4 = vadd.f32 %v2173_v27, %v844_v21  ;;  %v1008_v50 = vadd.f32 %v992_v18, %v955_v54  ;;  %v744_v0 = vadd.f32 %v728_v5, %v691_v17  ;;  %v868_v30 = vld [vmem:[#allocation2 + $0x90] sm:$0xff]  ;;  %v2531_v13 = vld [vmem:[#allocation13_spill] sm:$0xff] }
  0x42   : > { %v834_v8 = vmul.f32 %v2023_v32, %v971_v38  ;;  %v796_v26 = vadd.f32 %v2082_v47, %v743_v55  ;;  %v887_v27 = vmul.f32 %v2079_v46, %v866_v9  ;;  %v888_v12 = vmul.f32 %v2079_v46, %v867_v40  ;;  %v2532_v17 = vld [vmem:[#allocation9_spill] sm:$0xff]  ;;  %v974_v54 = vld [vmem:[#allocation2 + $0x92] sm:$0xff] }
  0x43   : > { %v950_v3 = vadd.f32 %v1997_v24, %v897_v42  ;;  %v951_v49 = vadd.f32 %v2000_v25, %v898_v4  ;;  %v1021_v57 = vpack.c.bf16 %v1008_v50, %v1007_v53  ;;  %v797_v24 = vadd.f32 %v2085_v48, %v744_v0  ;;  %v2533_v41 = vld [vmem:[#allocation5_spill] sm:$0xff]  ;;  %v2534_v50 = vld [vmem:[#allocation6_spill] sm:$0xff]  ;;  %v2535_v0 = vld [vmem:[#allocation3_spill] sm:$0xff] }
  0x44   : > { %v993_v14 = vmul.f32 %v2120_v56, %v972_v1  ;;  %v849_v19 = vadd.f32 %v833_v6, %v796_v26  ;;  %v570_v25 = vmul.f32 %v2018_v31, %v2256_v7  ;;  %v571_v47 = vmul.f32 %v2018_v31, %v2261_v22 }
  0x45   : > { %v1003_v2 = vadd.f32 %v2176_v52, %v950_v3  ;;  %v1004_v28 = vadd.f32 %v2527_v63, %v951_v49  ;;  %v850_v59 = vadd.f32 %v834_v8, %v797_v24  ;;  %v676_v16 = vmul.f32 %v2074_v45, %v970_v10  ;;  %v2530_v10 = vld [vmem:[#allocation12_spill] sm:$0xff]  ;;  %v2536_v49 = vld [vmem:[#allocation18_spill] sm:$0xff] }
  0x46   : > { %v677_v29 = vmul.f32 %v2074_v45, %v971_v38  ;;  %v729_v52 = vmul.f32 %v1994_v23, %v866_v9  ;;  %v903_v48 = vadd.f32 %v887_v27, %v849_v19  ;;  %v639_v11 = vadd.f32 %v2528_v58, %v570_v25  ;;  %v2537_v27 = vld [vmem:[#allocation19_spill] sm:$0xff]  ;;  %v975_v25 = vld [vmem:[#allocation2 + $0x9a] sm:$0xff] }
  0x47   : > { %v1019_v36 = vpack.c.bf16 %v1004_v28, %v1003_v2  ;;  %v640_v61 = vadd.f32 %v2529_v37, %v571_v47  ;;  %v904_v34 = vadd.f32 %v888_v12, %v850_v59  ;;  %v994_v7 = vmul.f32 %v2120_v56, %v973_v33  ;;  %v2538_v2 = vld [vmem:[#allocation7_spill] sm:$0xff] }
  0x48   : > { %v730_v35 = vmul.f32 %v1994_v23, %v867_v40  ;;  %v835_v22 = vmul.f32 %v2023_v32, %v972_v1  ;;  %v956_v62 = vadd.f32 %v2530_v10, %v903_v48  ;;  %v692_v38 = vadd.f32 %v676_v16, %v639_v11 }
  0x49   : > { %1688 = vmatprep.mubr.bf16.mxu0 %v1019_v36  ;;  %v693_v44 = vadd.f32 %v677_v29, %v640_v61  ;;  %v836_v15 = vmul.f32 %v2023_v32, %v973_v33  ;;  %v957_v18 = vadd.f32 %v2531_v13, %v904_v34  ;;  %v889_v21 = vmul.f32 %v2079_v46, %v868_v30  ;;  %v2540_v36 = vld [vmem:[#allocation4_spill] sm:$0xff]  ;;  %v870_v61 = vld [vmem:[#allocation2 + $0xa8] sm:$0xff]  ;;  %v871_v34 = vld [vmem:[#allocation2 + $0xb0] sm:$0xff] }
  0x4a   : > { %1689 = vmatmul.mubr.bf16.vlgmr.msra.gmra.mrb[0].mxu0 %v1020_v39  ;;  %v890_v20 = vmul.f32 %v2079_v46, %v869_v43  ;;  %v943_v42 = vmul.f32 %v2533_v41, %v2532_v17  ;;  %v1009_v53 = vadd.f32 %v993_v14, %v956_v62  ;;  %v745_v5 = vadd.f32 %v729_v52, %v692_v38  ;;  %v2539_v52 = vld [vmem:[#allocation8_spill] sm:$0xff]  ;;  %v2542_v13 = vld [vmem:[#allocation10_spill] sm:$0xff] }
  0x4b   : > { %1692 = vmatprep.mubr.bf16.mxu0 %v1021_v57  ;;  %v746_v4 = vadd.f32 %v730_v35, %v693_v44  ;;  %v995_v55 = vmul.f32 %v2120_v56, %v974_v54  ;;  %v1010_v6 = vadd.f32 %v994_v7, %v957_v18  ;;  %v572_v3 = vmul.f32 %v2018_v31, %v866_v9  ;;  %v2541_v62 = vld [vmem:[#allocation20_spill] sm:$0xff] }
  0x4c   : > { %v573_v39 = vmul.f32 %v2018_v31, %v867_v40  ;;  %v625_v8 = vmul.f32 %v2535_v0, %v2534_v50  ;;  %v798_v26 = vadd.f32 %v2536_v49, %v745_v5  ;;  %v626_v57 = vmul.f32 %v2535_v0, %v2538_v2 }
  0x4d   : > { %v799_v12 = vadd.f32 %v2537_v27, %v746_v4  ;;  %v678_v24 = vmul.f32 %v2074_v45, %v972_v1  ;;  %v1022_v14 = vpack.c.bf16 %v1010_v6, %v1009_v53  ;;  %v679_v28 = vmul.f32 %v2074_v45, %v973_v33  ;;  %v2543_v53 = vld [vmem:[#allocation11_spill] sm:$0xff] }
  0x4e   : > { %v641_v63 = vadd.f32 %v625_v8, %v572_v3  ;;  %v731_v9 = vmul.f32 %v1994_v23, %v868_v30  ;;  %v851_v19 = vadd.f32 %v835_v22, %v798_v26  ;;  %v642_v47 = vadd.f32 %v626_v57, %v573_v39 }
  0x4f   : > { %v852_v40 = vadd.f32 %v836_v15, %v799_v12  ;;  %v732_v59 = vmul.f32 %v1994_v23, %v869_v43  ;;  %v996_v16 = vmul.f32 %v2120_v56, %v975_v25  ;;  %v784_v48 = vmul.f32 %v2540_v36, %v2539_v52 }
  0x50   : > { %v694_v29 = vadd.f32 %v678_v24, %v641_v63  ;;  %v785_v1 = vmul.f32 %v2540_v36, %v2532_v17  ;;  %v905_v58 = vadd.f32 %v889_v21, %v851_v19  ;;  %v695_v33 = vadd.f32 %v679_v28, %v642_v47  ;;  %v976_v21 = vld [vmem:[#allocation2 + $0xaa] sm:$0xff]  ;;  %v977_v24 = vld [vmem:[#allocation2 + $0xb2] sm:$0xff]  ;;  %v872_v47 = vld [vmem:[#allocation2 + $0xc0] sm:$0xff] }
  0x51   : > { %v906_v11 = vadd.f32 %v890_v20, %v852_v40  ;;  %v837_v37 = vmul.f32 %v2023_v32, %v974_v54  ;;  %v838_v35 = vmul.f32 %v2023_v32, %v975_v25  ;;  %v891_v22 = vmul.f32 %v2079_v46, %v870_v61 }
  0x52   : > { %1693 = vmatmul.mubr.bf16.gmra.mrb[4].mxu0 %v1022_v14  ;;  %v747_v7 = vadd.f32 %v731_v9, %v694_v29  ;;  %v892_v10 = vmul.f32 %v2079_v46, %v871_v34  ;;  %v958_v38 = vadd.f32 %v2541_v62, %v905_v58  ;;  %v748_v15 = vadd.f32 %v732_v59, %v695_v33 }
  0x53   : > { %v959_v44 = vadd.f32 %v943_v42, %v906_v11  ;;  %v944_v18 = vmul.f32 %v2533_v41, %v2542_v13  ;;  %v945_v5 = vmul.f32 %v2533_v41, %v2543_v53  ;;  %v997_v4 = vmul.f32 %v2120_v56, %v976_v21 }
  0x54   : > { %v800_v20 = vadd.f32 %v784_v48, %v747_v7  ;;  %v574_v6 = vmul.f32 %v2018_v31, %v868_v30  ;;  %v1011_v3 = vadd.f32 %v995_v55, %v958_v38  ;;  %v801_v50 = vadd.f32 %v785_v1, %v748_v15  ;;  %v2544_v7 = vld [vmem:[#allocation14_spill] sm:$0xff] }
  0x55   : > { %v1012_v39 = vadd.f32 %v996_v16, %v959_v44  ;;  %v575_v8 = vmul.f32 %v2018_v31, %v869_v43  ;;  %v627_v42 = vmul.f32 %v2535_v0, %v2539_v52  ;;  %v628_v26 = vmul.f32 %v2535_v0, %v2532_v17  ;;  %v873_v52 = vld [vmem:[#allocation2 + $0xc8] sm:$0xff] }
  0x56   : > { %v853_v49 = vadd.f32 %v837_v37, %v800_v20  ;;  %v680_v27 = vmul.f32 %v2074_v45, %v974_v54  ;;  %v854_v2 = vadd.f32 %v838_v35, %v801_v50  ;;  %v681_v57 = vmul.f32 %v2074_v45, %v975_v25  ;;  %v978_v50 = vld [vmem:[#allocation2 + $0xc2] sm:$0xff] }
  0x57   : > { %v1023_v12 = vpack.c.bf16 %v1012_v39, %v1011_v3  ;;  %v733_v30 = vmul.f32 %v1994_v23, %v870_v61  ;;  %v643_v14 = vadd.f32 %v627_v42, %v574_v6  ;;  %v644_v63 = vadd.f32 %v628_v26, %v575_v8  ;;  %v979_v8 = vld [vmem:[#allocation2 + $0xca] sm:$0xff] }
  0x58   : > { %v907_v55 = vadd.f32 %v891_v22, %v853_v49  ;;  %v734_v43 = vmul.f32 %v1994_v23, %v871_v34  ;;  %v908_v28 = vadd.f32 %v892_v10, %v854_v2  ;;  %v998_v9 = vmul.f32 %v2120_v56, %v977_v24  ;;  %v2545_v22 = vld [vmem:[#allocation15_spill] sm:$0xff] }
  0x59   : > { %1696 = vmatprep.mubr.bf16.mxu1 %v1023_v12  ;;  %v786_v17 = vmul.f32 %v2540_v36, %v2542_v13  ;;  %v696_v19 = vadd.f32 %v680_v27, %v643_v14  ;;  %v697_v40 = vadd.f32 %v681_v57, %v644_v63  ;;  %v787_v25 = vmul.f32 %v2540_v36, %v2543_v53  ;;  %v874_v57 = vld [vmem:[#allocation2 + $0xd8] sm:$0xff] }
  0x5a   : > { %v960_v54 = vadd.f32 %v944_v18, %v907_v55  ;;  %v961_v59 = vadd.f32 %v945_v5, %v908_v28  ;;  %v839_v16 = vmul.f32 %v2023_v32, %v976_v21  ;;  %v840_v29 = vmul.f32 %v2023_v32, %v977_v24 }
  0x5b   : > { %v893_v48 = vmul.f32 %v2079_v46, %v872_v47  ;;  %v749_v58 = vadd.f32 %v733_v30, %v696_v19  ;;  %v750_v11 = vadd.f32 %v734_v43, %v697_v40  ;;  %v894_v33 = vmul.f32 %v2079_v46, %v873_v52  ;;  %v875_v30 = vld [vmem:[#allocation2 + $0xe0] sm:$0xff] }
  0x5c   : > { %v1013_v1 = vadd.f32 %v997_v4, %v960_v54  ;;  %v1014_v37 = vadd.f32 %v998_v9, %v961_v59  ;;  %v946_v35 = vmul.f32 %v2533_v41, %v2544_v7  ;;  %v947_v10 = vmul.f32 %v2533_v41, %v2545_v22  ;;  %v981_v40 = vld [vmem:[#allocation2 + $0xe2] sm:$0xff] }
  0x5d   : > { %v802_v62 = vadd.f32 %v786_v17, %v749_v58  ;;  %v803_v38 = vadd.f32 %v787_v25, %v750_v11  ;;  %v576_v44 = vmul.f32 %v2018_v31, %v870_v61  ;;  %v577_v18 = vmul.f32 %v2018_v31, %v871_v34 }
  0x5e   : > { %v1024_v15 = vpack.c.bf16 %v1014_v37, %v1013_v1  ;;  %v629_v20 = vmul.f32 %v2535_v0, %v2542_v13  ;;  %v630_v5 = vmul.f32 %v2535_v0, %v2543_v53  ;;  %v682_v3 = vmul.f32 %v2074_v45, %v976_v21 }
  0x5f   : > { %v855_v4 = vadd.f32 %v839_v16, %v802_v62  ;;  %v856_v6 = vadd.f32 %v840_v29, %v803_v38  ;;  %v683_v39 = vmul.f32 %v2074_v45, %v977_v24  ;;  %v735_v42 = vmul.f32 %v1994_v23, %v872_v47 }
  0x60   : > { %1697 = vmatmul.mubr.bf16.vlgmr.msra.gmra.mrb[0].mxu1 %v1024_v15  ;;  %v645_v49 = vadd.f32 %v629_v20, %v576_v44  ;;  %v646_v61 = vadd.f32 %v630_v5, %v577_v18  ;;  %v736_v31 = vmul.f32 %v1994_v23, %v873_v52  ;;  %v999_v26 = vmul.f32 %v2120_v56, %v978_v50 }
  0x61   : > { %v909_v34 = vadd.f32 %v893_v48, %v855_v4  ;;  %v910_v13 = vadd.f32 %v894_v33, %v856_v6  ;;  %v1000_v0 = vmul.f32 %v2120_v56, %v979_v8  ;;  %v788_v45 = vmul.f32 %v2540_v36, %v2544_v7 }
  0x62   : > { %v698_v53 = vadd.f32 %v682_v3, %v645_v49  ;;  %v699_v27 = vadd.f32 %v683_v39, %v646_v61  ;;  %v789_v21 = vmul.f32 %v2540_v36, %v2545_v22  ;;  %v841_v24 = vmul.f32 %v2023_v32, %v978_v50  ;;  %v980_v36 = vld [vmem:[#allocation2 + $0xda] sm:$0xff] }
  0x63   : > { %v962_v12 = vadd.f32 %v946_v35, %v909_v34  ;;  %v963_v2 = vadd.f32 %v947_v10, %v910_v13  ;;  %v842_v14 = vmul.f32 %v2023_v32, %v979_v8  ;;  %v895_v17 = vmul.f32 %v2079_v46, %v874_v57 }
  0x64   : > { %v751_v55 = vadd.f32 %v735_v42, %v698_v53  ;;  %v752_v23 = vadd.f32 %v736_v31, %v699_v27  ;;  %v896_v54 = vmul.f32 %v2079_v46, %v875_v30  ;;  %v948_v59 = vmul.f32 %v2264_v51, %v2533_v41  ;;  %v2426_v51 = vld [vmem:[%s2484_s5] ss:$0 sm:$0xff] }
  0x65   : > { %v1015_v63 = vadd.f32 %v999_v26, %v962_v12  ;;  %v1016_v43 = vadd.f32 %v1000_v0, %v963_v2  ;;  %v949_v32 = vmul.f32 %v2267_v60, %v2533_v41  ;;  %v1001_v52 = vmul.f32 %v2120_v56, %v980_v36 }
  0x66   : > { %v804_v28 = vadd.f32 %v788_v45, %v751_v55  ;;  %v805_v9 = vadd.f32 %v789_v21, %v752_v23  ;;  %v1002_v46 = vmul.f32 %v2120_v56, %v981_v40 }
  0x67   : > { %v1025_v19 = vpack.c.bf16 %v1016_v43, %v1015_v63 }
  0x68   : > { %v857_v25 = vadd.f32 %v841_v24, %v804_v28  ;;  %v858_v47 = vadd.f32 %v842_v14, %v805_v9 }
  0x69   : > { %1700 = vmatprep.mubr.bf16.mxu1 %v1025_v19 }
  0x6a   : > { %v911_v16 = vadd.f32 %v895_v17, %v857_v25  ;;  %v912_v29 = vadd.f32 %v896_v54, %v858_v47 }
  0x6c   : > { %v964_v48 = vadd.f32 %v948_v59, %v911_v16  ;;  %v965_v1 = vadd.f32 %v949_v32, %v912_v29 }
  0x6e   : > { %v1017_v58 = vadd.f32 %v1001_v52, %v964_v48  ;;  %v1018_v11 = vadd.f32 %v1002_v46, %v965_v1 }
  0x70   : > { %v1026_v33 = vpack.c.bf16 %v1018_v11, %v1017_v58 }
  0x72   : > { %1701 = vmatmul.mubr.bf16.gmra.mrb[4].mxu1 %v1026_v33 }
 0x11d   : > { %v1690_v60 = vpop.f32.mrb[0].mxu0 }
 0x11e   : > { %v1132_v41 = vpop.f32.mrb[1].mxu0  ;;  %v1141_v7 = vadd.f32 %v1690_v60, %v2426_v51 }
 0x11f   : > { %v1133_v56 = vadd.f32 %v2426_v51, %v1132_v41  ;;  %v1691_v37 = vpop.f32.mrb[2].mxu0 }
 0x120   : > { %v1144_v35 = vadd.f32 %v1691_v37, %v2426_v51  ;;  %v1135_v22 = vpop.f32.mrb[3].mxu0  ;;  %v1218_v20 = vmul.f32 %v1141_v7, %v1141_v7 }
 0x121   : > { %v1136_v10 = vadd.f32 %v2426_v51, %v1135_v22  ;;  %v1216_v38 = vmul.f32 %v1133_v56, %v1133_v56 }
 0x122   : > { %v1617_v62 = vpack.c.bf16 %v1144_v35, %v1141_v7  ;;  %v1219_v39 = vmul.f32 %v1144_v35, %v1144_v35 }
 0x123   : > { %v1195_v44 = vadd.f32 %v1136_v10, %v1133_v56  ;;  %v1217_v15 = vmul.f32 %v1136_v10, %v1136_v10  ;;  %v1612_v18 = vpack.c.bf16 %v1136_v10, %v1133_v56 }
 0x124   : > { %1649 = vst [vmem:[%s2434_s16 + $0x8] sm:$0xff] %v1617_v62  }
 0x125   : > { %v1196_v5 = vadd.f32 %v1195_v44, %v1141_v7  ;;  %v1232_v4 = vadd.f32 %v1217_v15, %v1216_v38  ;;  %1613 = vst [vmem:[%s2434_s16] sm:$0xff] %v1612_v18   ;;  %v1694_v6 = vpop.f32.mrb[4].mxu0 }
 0x126   : > { %v1148_v3 = vpop.f32.mrb[5].mxu0  ;;  %v1157_v42 = vadd.f32 %v1694_v6, %v2426_v51 }
 0x127   : > { %v1233_v50 = vadd.f32 %v1232_v4, %v1218_v20  ;;  %v1149_v8 = vadd.f32 %v2426_v51, %v1148_v3  ;;  %v1197_v49 = vadd.f32 %v1196_v5, %v1144_v35  ;;  %v1695_v61 = vpop.f32.mrb[6].mxu0 }
 0x128   : > { %v1160_v31 = vadd.f32 %v1695_v61, %v2426_v51  ;;  %v1151_v34 = vpop.f32.mrb[7].mxu0  ;;  %v1222_v57 = vmul.f32 %v1157_v42, %v1157_v42 }
 0x129   : > { %v1198_v13 = vadd.f32 %v1197_v49, %v1149_v8  ;;  %v1220_v26 = vmul.f32 %v1149_v8, %v1149_v8  ;;  %v1234_v0 = vadd.f32 %v1233_v50, %v1219_v39  ;;  %v1152_v53 = vadd.f32 %v2426_v51, %v1151_v34 }
 0x12a   : > { %v1627_v27 = vpack.c.bf16 %v1160_v31, %v1157_v42  ;;  %v1223_v23 = vmul.f32 %v1160_v31, %v1160_v31 }
 0x12b   : > { %v1235_v45 = vadd.f32 %v1234_v0, %v1220_v26  ;;  %v1199_v21 = vadd.f32 %v1198_v13, %v1152_v53  ;;  %v1221_v12 = vmul.f32 %v1152_v53, %v1152_v53  ;;  %v1622_v2 = vpack.c.bf16 %v1152_v53, %v1149_v8 }
 0x12c   : > { %1651 = vst [vmem:[%s2434_s16 + $0x18] sm:$0xff] %v1627_v27  }
 0x12d   : > { %v1200_v30 = vadd.f32 %v1199_v21, %v1157_v42  ;;  %v1236_v55 = vadd.f32 %v1235_v45, %v1221_v12  ;;  %1650 = vst [vmem:[%s2434_s16 + $0x10] sm:$0xff] %v1622_v2  }
 0x12f   : > { %v1237_v24 = vadd.f32 %v1236_v55, %v1222_v57  ;;  %v1201_v14 = vadd.f32 %v1200_v30, %v1160_v31 }
 0x131   : > { %v1238_v63 = vadd.f32 %v1237_v24, %v1223_v23 }
 0x133   : > { %v1698_v43 = vpop.f32.mrb[0].mxu1 }
 0x134   : > { %v1173_v28 = vadd.f32 %v1698_v43, %v2426_v51  ;;  %v1164_v9 = vpop.f32.mrb[1].mxu1 }
 0x135   : > { %v1165_v17 = vadd.f32 %v2426_v51, %v1164_v9  ;;  %v1699_v54 = vpop.f32.mrb[2].mxu1 }
 0x136   : > { %v1176_v19 = vadd.f32 %v1699_v54, %v2426_v51  ;;  %v1167_v36 = vpop.f32.mrb[3].mxu1  ;;  %v1226_v46 = vmul.f32 %v1173_v28, %v1173_v28 }
 0x137   : > { %v1202_v40 = vadd.f32 %v1201_v14, %v1165_v17  ;;  %v1224_v25 = vmul.f32 %v1165_v17, %v1165_v17  ;;  %v1168_v47 = vadd.f32 %v2426_v51, %v1167_v36 }
 0x138   : > { %v1637_v59 = vpack.c.bf16 %v1176_v19, %v1173_v28  ;;  %v1227_v58 = vmul.f32 %v1176_v19, %v1176_v19 }
 0x139   : > { %v1239_v32 = vadd.f32 %v1238_v63, %v1224_v25  ;;  %v1203_v16 = vadd.f32 %v1202_v40, %v1168_v47  ;;  %v1225_v29 = vmul.f32 %v1168_v47, %v1168_v47  ;;  %v1632_v52 = vpack.c.bf16 %v1168_v47, %v1165_v17 }
 0x13a   : > { %1653 = vst [vmem:[%s2434_s16 + $0x28] sm:$0xff] %v1637_v59  }
 0x13b   : > { %v1204_v48 = vadd.f32 %v1203_v16, %v1173_v28  ;;  %v1240_v1 = vadd.f32 %v1239_v32, %v1225_v29  ;;  %1652 = vst [vmem:[%s2434_s16 + $0x20] sm:$0xff] %v1632_v52  }
 0x13d   : > { %v1241_v11 = vadd.f32 %v1240_v1, %v1226_v46  ;;  %v1205_v33 = vadd.f32 %v1204_v48, %v1176_v19 }
 0x13f   : > { %v1242_v60 = vadd.f32 %v1241_v11, %v1227_v58 }
 0x145   : > { %v1702_v41 = vpop.f32.mrb[4].mxu1 }
 0x146   : > { %v1189_v56 = vadd.f32 %v1702_v41, %v2426_v51  ;;  %v1180_v37 = vpop.f32.mrb[5].mxu1 }
 0x147   : > { %v1181_v7 = vadd.f32 %v2426_v51, %v1180_v37  ;;  %v1703_v35 = vpop.f32.mrb[6].mxu1 }
 0x148   : > { %v1192_v22 = vadd.f32 %v1703_v35, %v2426_v51  ;;  %v1183_v10 = vpop.f32.mrb[7].mxu1  ;;  %v1230_v6 = vmul.f32 %v1189_v56, %v1189_v56 }
 0x149   : > { %v1206_v62 = vadd.f32 %v1205_v33, %v1181_v7  ;;  %v1228_v38 = vmul.f32 %v1181_v7, %v1181_v7  ;;  %v1184_v44 = vadd.f32 %v2426_v51, %v1183_v10 }
 0x14a   : > { %v1647_v15 = vpack.c.bf16 %v1192_v22, %v1189_v56  ;;  %v1231_v50 = vmul.f32 %v1192_v22, %v1192_v22 }
 0x14b   : > { %v1243_v18 = vadd.f32 %v1242_v60, %v1228_v38  ;;  %v1207_v20 = vadd.f32 %v1206_v62, %v1184_v44  ;;  %v1229_v5 = vmul.f32 %v1184_v44, %v1184_v44  ;;  %v1642_v4 = vpack.c.bf16 %v1184_v44, %v1181_v7 }
 0x14c   : > { %1655 = vst [vmem:[%s2434_s16 + $0x38] sm:$0xff] %v1647_v15  }
 0x14d   : > { %v1208_v3 = vadd.f32 %v1207_v20, %v1189_v56  ;;  %v1244_v39 = vadd.f32 %v1243_v18, %v1229_v5  ;;  %1654 = vst [vmem:[%s2434_s16 + $0x30] sm:$0xff] %v1642_v4  }
 0x14f   : > { %v1209_v8 = vadd.f32 %v1208_v3, %v1192_v22  ;;  %v1245_v49 = vadd.f32 %v1244_v39, %v1230_v6 }
 0x151   : > { %v1210_v61 = vrot.slane %v1209_v8, 4  ;;  %v1246_v42 = vadd.f32 %v1245_v49, %v1231_v50 }
 0x153   : > { %v1211_v51 = vadd.f32 %v1210_v61, %v1209_v8  ;;  %v1247_v31 = vrot.slane %v1246_v42, 4 }
 0x155   : > { %v1212_v34 = vrot.slane %v1211_v51, 2  ;;  %v1248_v13 = vadd.f32 %v1247_v31, %v1246_v42 }
 0x157   : > { %v1213_v26 = vadd.f32 %v1212_v34, %v1211_v51  ;;  %v1249_v0 = vrot.slane %v1248_v13, 2 }
 0x159   : > { %v1214_v53 = vrot.slane %v1213_v26, 1  ;;  %v1250_v27 = vadd.f32 %v1249_v0, %v1248_v13 }
 0x15b   : > { %v1251_v45 = vrot.slane %v1250_v27, 1  ;;  %v1215_v21 = vadd.f32 %v1214_v53, %v1213_v26 }
 0x15d   : > { %v1252_v12 = vadd.f32 %v1251_v45, %v1250_v27 }
 0x15f   : > { %v1254_v2 = vsel %vm1253_vm0, %v1215_v21, %v1252_v12 }
 0x160   : > { %1255 = vst [vmem:[%s465_s8] sm:$0x3] %v1254_v2 }
 0x161 PF: > { %s18_s28 = sadd.s32 1, %s1819_s28   ;;  %s2546_s24 = smov %s1811_s26 }
 0x162   : > { %p15_p13 = scmp.ge.s32.totalorder %s18_s28, 6   ;;  %s2547_s25 = smov %s1815_s27 }
 0x163   : > { %s2548_s26 = smov %s2551_s29  ;;  %s2549_s27 = smov %s2555_s30 }
 0x164   :  { %17 = sbr.rel (!%p15_p13) target bundleno = 3 (0x3), region = 95 }

</bundles_post_ra>
